<compile_context>
chip_gen: v5e
topology: v5e:2x2
jax: 0.10.0
libtpu: 0.0.40
codegen_flags: <defaults>
</compile_context>

<pallas_src>
import numpy as np
import jax
import jax.numpy as jnp
from jax import lax
from jax.experimental import pallas as pl
from jax.experimental.pallas import tpu as pltpu

# ---- module hyperparameters (the PyTorch globals d_model, d_k, d_v, n_head, d_ff) ----
d_model = 32
d_k = 8
d_v = 8
n_head = 4
d_ff = 64
LN_EPS = 1e-5


def encoder_layer_kernel(x_ref, bias_ref,
                         wqkv_ref, bqkv_ref, wo_ref, small_ref,
                         w1_ref, b1_ref, w2_ref,
                         out_ref):
    bt, S, dm = x_ref.shape
    H = n_head

    x = x_ref[...]                         # [bt, S, d_model]
    bias = bias_ref[...]                   # [bt, 1, S] additive (-1e9 on masked keys)
    x2d = x.reshape(bt * S, dm)

    # ---- fused QKV projection: one M=bt*S, K=32, N=96 matmul (scale folded into Q) ----
    qkv = jnp.dot(x2d, wqkv_ref[...],
                  preferred_element_type=jnp.float32) + bqkv_ref[...]   # [bt*S, 3*H*d_k]

    hk = H * d_k
    hv = H * d_v
    q = qkv[:, 0:hk].reshape(bt, S, H, d_k).transpose(0, 2, 1, 3).reshape(bt * H, S, d_k)
    k = qkv[:, hk:2 * hk].reshape(bt, S, H, d_k).transpose(0, 2, 1, 3).reshape(bt * H, S, d_k)
    v = qkv[:, 2 * hk:2 * hk + hv].reshape(bt, S, H, d_v).transpose(0, 2, 1, 3).reshape(bt * H, S, d_v)

    # ---- scaled dot-product attention, all heads in one batched contraction ----
    scores = jnp.einsum('bqd,bkd->bqk', q, k,
                        preferred_element_type=jnp.float32)             # [bt*H, S, S]

    # additive key-padding bias, broadcast along heads and query rows
    bias3 = jnp.broadcast_to(bias[:, None, :, :], (bt, H, 1, S)).reshape(bt * H, 1, S)
    scores = scores + bias3

    # numerically stable softmax; reciprocal on the EUP (+1 Newton step for f32 accuracy)
    scores = scores - jnp.max(scores, axis=-1, keepdims=True)
    p = jnp.exp(scores)
    den = jnp.sum(p, axis=-1, keepdims=True)
    inv = pl.reciprocal(den, approx=True)
    inv = inv * (2.0 - den * inv)
    attn = p * inv                                                      # [bt*H, S, S]

    ctx = jnp.einsum('bqk,bkd->bqd', attn, v,
                     preferred_element_type=jnp.float32)                # [bt*H, S, d_v]

    # ---- output projection: one M=bt*S, K=H*d_v, N=d_model matmul ----
    ctx2d = ctx.reshape(bt, H, S, d_v).transpose(0, 2, 1, 3).reshape(bt * S, H * d_v)
    attn_out = jnp.dot(ctx2d, wo_ref[...],
                       preferred_element_type=jnp.float32)              # [bt*S, d_model]

    small = small_ref[...]         # packed [4, d_model]: bo, gamma, beta, b2
    bo = small[0:1, :]
    gamma = small[1:2, :]
    beta = small[2:3, :]
    b2 = small[3:4, :]

    # residual + LayerNorm (stats in f32, rsqrt on the EUP)
    y = (attn_out + bo) + x2d
    mu = jnp.mean(y, axis=-1, keepdims=True)
    var = jnp.mean((y - mu) ** 2, axis=-1, keepdims=True)
    y = (y - mu) * lax.rsqrt(var + LN_EPS) * gamma + beta

    # ---- position-wise feed-forward on flattened rows (full-width MXU passes) ----
    h1 = jnp.dot(y, w1_ref[...], preferred_element_type=jnp.float32) + b1_ref[...]
    h1 = jnp.maximum(h1, 0.0)
    out = jnp.dot(h1, w2_ref[...], preferred_element_type=jnp.float32) + b2
    out_ref[...] = out.reshape(bt, S, dm)


def encoder_layer(x, attn_bias, packed):
    """x: [B, S, d_model] f32; attn_bias: [B, 1, S] f32 additive bias (-1e9 masked)."""
    B, S, dm = x.shape
    assert dm == d_model

    # Single grid step unless each of two steps would carry >= 256 rows
    # (fills the MXU M dimension on v6e/v7x; avoids paying the ~600-cycle
    # per-step overhead twice for overhead-dominated work on v5e/v6e).
    if B % 2 == 0 and (B // 2) * S >= 256:
        bt = B // 2
    else:
        bt = B
    assert B % bt == 0
    grid = (B // bt,)

    in_specs = [
        pl.BlockSpec((bt, S, dm), lambda i: (i, 0, 0)),   # enc_inputs
        pl.BlockSpec((bt, 1, S), lambda i: (i, 0, 0)),    # additive key-padding bias
    ]
    # packed weights: fully resident (tiny), same block every step
    for p in packed:
        in_specs.append(pl.BlockSpec(p.shape, lambda i, nd=p.ndim: (0,) * nd))

    return pl.pallas_call(
        encoder_layer_kernel,
        out_shape=jax.ShapeDtypeStruct((B, S, dm), jnp.float32),
        grid_spec=pltpu.PrefetchScalarGridSpec(
            num_scalar_prefetch=0,
            grid=grid,
            in_specs=in_specs,
            out_specs=pl.BlockSpec((bt, S, dm), lambda i: (i, 0, 0)),
        ),
        compiler_params=pltpu.CompilerParams(dimension_semantics=("parallel",)),
    )(x, attn_bias, *packed)


def pack_params(params):
    """Fuse the 14 PyTorch-layout params into 7 kernel params."""
    wq, bq, wk, bk, wv, bv, wo, bo, gamma, beta, w1, b1, w2, b2 = params
    s = np.float32(1.0 / np.sqrt(d_k))

    # fused QKV weight [d_model, 3*H*d_k] in original column order
    # (per-head split happens in-kernel via a static reshape/transpose);
    # 1/sqrt(d_k) folded into the Q block.
    w_qkv = jnp.concatenate([wq * s, wk, wv], axis=-1)                 # [32, 96]
    b_qkv = jnp.concatenate([bq * s, bk, bv], axis=-1)                 # [1, 96]

    small = jnp.concatenate([bo, gamma, beta, b2], axis=0)             # [4, d_model]
    # wo stays in its original [n_head*d_v, d_model] layout (single 2-D matmul).
    return (w_qkv, b_qkv, wo, small, w1, b1, w2)


def reference(x, key_pad_bool, params):
    """Pure-JAX mirror of the PyTorch EncoderLayer.forward (unpacked params)."""
    wq, bq, wk, bk, wv, bv, wo, bo, g, beta, w1, b1, w2, b2 = params
    B, S, _ = x.shape
    q = (x @ wq + bq).reshape(B, S, n_head, d_k).transpose(0, 2, 1, 3)
    k = (x @ wk + bk).reshape(B, S, n_head, d_k).transpose(0, 2, 1, 3)
    v = (x @ wv + bv).reshape(B, S, n_head, d_v).transpose(0, 2, 1, 3)
    scores = jnp.einsum('bhqd,bhkd->bhqk', q, k) / np.sqrt(d_k)
    mask = jnp.broadcast_to(key_pad_bool[:, None, None, :], (B, n_head, S, S))
    scores = jnp.where(mask, -1e9, scores)
    attn = jax.nn.softmax(scores, axis=-1)
    ctx = jnp.einsum('bhqk,bhkd->bhqd', attn, v).transpose(0, 2, 1, 3).reshape(B, S, n_head * d_v)
    y = ctx @ wo + bo + x
    mu = y.mean(-1, keepdims=True)
    var = ((y - mu) ** 2).mean(-1, keepdims=True)
    y = (y - mu) / jnp.sqrt(var + LN_EPS) * g + beta
    h = jnp.maximum(y @ w1 + b1, 0.0)
    return h @ w2 + b2


def make_params(key):
    keys = jax.random.split(key, 10)
    scale = 0.1
    wq = scale * jax.random.normal(keys[0], (d_model, d_k * n_head), jnp.float32)
    bq = scale * jax.random.normal(keys[1], (1, d_k * n_head), jnp.float32)
    wk = scale * jax.random.normal(keys[2], (d_model, d_k * n_head), jnp.float32)
    bk = scale * jax.random.normal(keys[3], (1, d_k * n_head), jnp.float32)
    wv = scale * jax.random.normal(keys[4], (d_model, d_v * n_head), jnp.float32)
    bv = scale * jax.random.normal(keys[5], (1, d_v * n_head), jnp.float32)
    wo = scale * jax.random.normal(keys[6], (n_head * d_v, d_model), jnp.float32)
    bo = scale * jax.random.normal(keys[7], (1, d_model), jnp.float32)
    gamma = jnp.ones((1, d_model), jnp.float32)        # nn.LayerNorm default weight
    beta = jnp.zeros((1, d_model), jnp.float32)        # nn.LayerNorm default bias
    w1 = scale * jax.random.normal(keys[8], (d_model, d_ff), jnp.float32)
    b1 = jnp.zeros((1, d_ff), jnp.float32)
    w2 = scale * jax.random.normal(keys[9], (d_ff, d_model), jnp.float32)
    b2 = jnp.zeros((1, d_model), jnp.float32)
    return (wq, bq, wk, bk, wv, bv, wo, bo, gamma, beta, w1, b1, w2, b2)


if __name__ == "__main__":
    B, S = 2, 8
    key = jax.random.PRNGKey(0)
    k_x, k_p = jax.random.split(key)

    x = jax.random.normal(k_x, (B, S, d_model), jnp.float32)
    raw_params = make_params(k_p)
    packed = pack_params(raw_params)

    # padding-style self-attention mask: last 2 key positions of batch 1 are masked
    valid_len = jnp.array([S, S - 2])
    key_pad = jnp.arange(S)[None, :] >= valid_len[:, None]            # [B, S] bool
    attn_bias = key_pad.astype(jnp.float32)[:, None, :] * jnp.float32(-1e9)  # [B, 1, S]

    out = encoder_layer(x, attn_bias, packed)
    out = jax.block_until_ready(out)

    ref = reference(x, key_pad, raw_params)
    np.testing.assert_allclose(np.asarray(out), np.asarray(ref), rtol=2e-4, atol=2e-4)

    print("KERNEL_OK")
</pallas_src>

<mosaic_0001>
module attributes {stable_mosaic.version = 11 : i64} {
  func.func @encoder_layer_kernel(%arg0: i32, %arg1: memref<2x8x32xf32, #tpu.memory_space<vmem>>, %arg2: memref<2x1x8xf32, #tpu.memory_space<vmem>>, %arg3: memref<32x96xf32, #tpu.memory_space<vmem>>, %arg4: memref<1x96xf32, #tpu.memory_space<vmem>>, %arg5: memref<32x32xf32, #tpu.memory_space<vmem>>, %arg6: memref<4x32xf32, #tpu.memory_space<vmem>>, %arg7: memref<32x64xf32, #tpu.memory_space<vmem>>, %arg8: memref<1x64xf32, #tpu.memory_space<vmem>>, %arg9: memref<64x32xf32, #tpu.memory_space<vmem>>, %arg10: memref<2x8x32xf32, #tpu.memory_space<vmem>>) attributes {dimension_semantics = [#tpu.dimension_semantics<parallel>], iteration_bounds = array<i64: 1>, scalar_prefetch = 0 : i64, scratch_operands = 0 : i64, tpu.core_type = #tpu.core_type<tc>, window_params = [{transform_indices = @transform_0, window_bounds = array<i64: 2, 8, 32>}, {transform_indices = @transform_1, window_bounds = array<i64: 2, 1, 8>}, {pipeline_mode = #tpu.pipeline_mode<synchronous>, transform_indices = @transform_2, window_bounds = array<i64: 32, 96>}, {pipeline_mode = #tpu.pipeline_mode<synchronous>, transform_indices = @transform_3, window_bounds = array<i64: 1, 96>}, {pipeline_mode = #tpu.pipeline_mode<synchronous>, transform_indices = @transform_4, window_bounds = array<i64: 32, 32>}, {pipeline_mode = #tpu.pipeline_mode<synchronous>, transform_indices = @transform_5, window_bounds = array<i64: 4, 32>}, {pipeline_mode = #tpu.pipeline_mode<synchronous>, transform_indices = @transform_6, window_bounds = array<i64: 32, 64>}, {pipeline_mode = #tpu.pipeline_mode<synchronous>, transform_indices = @transform_7, window_bounds = array<i64: 1, 64>}, {pipeline_mode = #tpu.pipeline_mode<synchronous>, transform_indices = @transform_8, window_bounds = array<i64: 64, 32>}, {transform_indices = @transform_9, window_bounds = array<i64: 2, 8, 32>}]} {
    %c0 = arith.constant 0 : index
    %c0_0 = arith.constant 0 : index
    %c0_1 = arith.constant 0 : index
    %0 = vector.load %arg1[%c0, %c0_0, %c0_1] : memref<2x8x32xf32, #tpu.memory_space<vmem>>, vector<2x8x32xf32>
    %c0_2 = arith.constant 0 : index
    %c0_3 = arith.constant 0 : index
    %c0_4 = arith.constant 0 : index
    %1 = vector.load %arg2[%c0_2, %c0_3, %c0_4] : memref<2x1x8xf32, #tpu.memory_space<vmem>>, vector<2x1x8xf32>
    %2 = vector.shape_cast %0 : vector<2x8x32xf32> to vector<16x32xf32>
    %c0_5 = arith.constant 0 : index
    %c0_6 = arith.constant 0 : index
    %3 = vector.load %arg3[%c0_5, %c0_6] : memref<32x96xf32, #tpu.memory_space<vmem>>, vector<32x96xf32>
    %cst = arith.constant dense<0.000000e+00> : vector<16x96xf32>
    %4 = tpu.matmul %2, %3, %cst {dimension_numbers = #tpu.dot_dimension_numbers<[1], [0], [0], [1], [0, 0, 1, 1], [], []>} : vector<16x32xf32>, vector<32x96xf32>, vector<16x96xf32> -> vector<16x96xf32>
    %c0_7 = arith.constant 0 : index
    %c0_8 = arith.constant 0 : index
    %5 = vector.load %arg4[%c0_7, %c0_8] : memref<1x96xf32, #tpu.memory_space<vmem>>, vector<1x96xf32>
    %6 = vector.broadcast %5 : vector<1x96xf32> to vector<16x96xf32>
    %7 = arith.addf %4, %6 : vector<16x96xf32>
    %8 = vector.extract_strided_slice %7 {offsets = [0, 0], sizes = [16, 32], strides = [1, 1]} : vector<16x96xf32> to vector<16x32xf32>
    %9 = vector.shape_cast %8 : vector<16x32xf32> to vector<2x8x4x8xf32>
    %10 = tpu.transpose %9, [0, 2, 1, 3] : vector<2x8x4x8xf32> -> vector<2x4x8x8xf32>
    %11 = vector.shape_cast %10 : vector<2x4x8x8xf32> to vector<8x8x8xf32>
    %12 = vector.extract_strided_slice %7 {offsets = [0, 32], sizes = [16, 32], strides = [1, 1]} : vector<16x96xf32> to vector<16x32xf32>
    %13 = vector.shape_cast %12 : vector<16x32xf32> to vector<2x8x4x8xf32>
    %14 = tpu.transpose %13, [0, 2, 1, 3] : vector<2x8x4x8xf32> -> vector<2x4x8x8xf32>
    %15 = vector.shape_cast %14 : vector<2x4x8x8xf32> to vector<8x8x8xf32>
    %16 = vector.extract_strided_slice %7 {offsets = [0, 64], sizes = [16, 32], strides = [1, 1]} : vector<16x96xf32> to vector<16x32xf32>
    %17 = vector.shape_cast %16 : vector<16x32xf32> to vector<2x8x4x8xf32>
    %18 = tpu.transpose %17, [0, 2, 1, 3] : vector<2x8x4x8xf32> -> vector<2x4x8x8xf32>
    %19 = vector.shape_cast %18 : vector<2x4x8x8xf32> to vector<8x8x8xf32>
    "tpu.trace_start"() <{level = 10 : i32, message = "bqd,bkd->bqk"}> : () -> ()
    %cst_9 = arith.constant dense<0.000000e+00> : vector<8x8x8xf32>
    %20 = tpu.matmul %11, %15, %cst_9 {dimension_numbers = #tpu.dot_dimension_numbers<[2], [2], [1], [1], [0, 0, 0, 1, 1, 1], [0], [0]>} : vector<8x8x8xf32>, vector<8x8x8xf32>, vector<8x8x8xf32> -> vector<8x8x8xf32>
    "tpu.trace_stop"() : () -> ()
    %21 = vector.shape_cast %1 : vector<2x1x8xf32> to vector<2x1x1x8xf32>
    %22 = vector.shape_cast %21 : vector<2x1x1x8xf32> to vector<2x1x1x8xf32>
    %23 = vector.broadcast %22 : vector<2x1x1x8xf32> to vector<2x4x1x8xf32>
    %24 = vector.shape_cast %23 : vector<2x4x1x8xf32> to vector<8x1x8xf32>
    %25 = vector.broadcast %24 : vector<8x1x8xf32> to vector<8x8x8xf32>
    %26 = arith.addf %20, %25 : vector<8x8x8xf32>
    %cst_10 = arith.constant dense<0xFF800000> : vector<8x8xf32>
    %27 = vector.multi_reduction <maximumf>, %26, %cst_10 [2] : vector<8x8x8xf32> to vector<8x8xf32>
    %28 = vector.shape_cast %27 : vector<8x8xf32> to vector<8x8x1xf32>
    %29 = vector.broadcast %28 : vector<8x8x1xf32> to vector<8x8x8xf32>
    %30 = arith.subf %26, %29 : vector<8x8x8xf32>
    %31 = math.exp %30 : vector<8x8x8xf32>
    %cst_11 = arith.constant dense<0.000000e+00> : vector<8x8xf32>
    %32 = vector.multi_reduction <add>, %31, %cst_11 [2] : vector<8x8x8xf32> to vector<8x8xf32>
    %33 = vector.shape_cast %32 : vector<8x8xf32> to vector<8x8x1xf32>
    %34 = tpu.reciprocal %33 {approx = true} : vector<8x8x1xf32> -> vector<8x8x1xf32>
    %35 = arith.mulf %33, %34 : vector<8x8x1xf32>
    %cst_12 = arith.constant 2.000000e+00 : f32
    %36 = vector.broadcast %cst_12 : f32 to vector<8x8x1xf32>
    %37 = arith.subf %36, %35 : vector<8x8x1xf32>
    %38 = arith.mulf %34, %37 : vector<8x8x1xf32>
    %39 = vector.broadcast %38 : vector<8x8x1xf32> to vector<8x8x8xf32>
    %40 = arith.mulf %31, %39 : vector<8x8x8xf32>
    "tpu.trace_start"() <{level = 10 : i32, message = "bqk,bkd->bqd"}> : () -> ()
    %cst_13 = arith.constant dense<0.000000e+00> : vector<8x8x8xf32>
    %41 = tpu.matmul %40, %19, %cst_13 {dimension_numbers = #tpu.dot_dimension_numbers<[2], [1], [1], [2], [0, 0, 0, 1, 1, 2], [0], [0]>} : vector<8x8x8xf32>, vector<8x8x8xf32>, vector<8x8x8xf32> -> vector<8x8x8xf32>
    "tpu.trace_stop"() : () -> ()
    %42 = vector.shape_cast %41 : vector<8x8x8xf32> to vector<2x4x8x8xf32>
    %43 = tpu.transpose %42, [0, 2, 1, 3] : vector<2x4x8x8xf32> -> vector<2x8x4x8xf32>
    %44 = vector.shape_cast %43 : vector<2x8x4x8xf32> to vector<16x32xf32>
    %c0_14 = arith.constant 0 : index
    %c0_15 = arith.constant 0 : index
    %45 = vector.load %arg5[%c0_14, %c0_15] : memref<32x32xf32, #tpu.memory_space<vmem>>, vector<32x32xf32>
    %cst_16 = arith.constant dense<0.000000e+00> : vector<16x32xf32>
    %46 = tpu.matmul %44, %45, %cst_16 {dimension_numbers = #tpu.dot_dimension_numbers<[1], [0], [0], [1], [0, 0, 1, 1], [], []>} : vector<16x32xf32>, vector<32x32xf32>, vector<16x32xf32> -> vector<16x32xf32>
    %c0_17 = arith.constant 0 : index
    %c0_18 = arith.constant 0 : index
    %47 = vector.load %arg6[%c0_17, %c0_18] : memref<4x32xf32, #tpu.memory_space<vmem>>, vector<4x32xf32>
    %48 = vector.extract_strided_slice %47 {offsets = [0, 0], sizes = [1, 32], strides = [1, 1]} : vector<4x32xf32> to vector<1x32xf32>
    %49 = vector.extract_strided_slice %47 {offsets = [1, 0], sizes = [1, 32], strides = [1, 1]} : vector<4x32xf32> to vector<1x32xf32>
    %50 = vector.extract_strided_slice %47 {offsets = [2, 0], sizes = [1, 32], strides = [1, 1]} : vector<4x32xf32> to vector<1x32xf32>
    %51 = vector.extract_strided_slice %47 {offsets = [3, 0], sizes = [1, 32], strides = [1, 1]} : vector<4x32xf32> to vector<1x32xf32>
    %52 = vector.broadcast %48 : vector<1x32xf32> to vector<16x32xf32>
    %53 = arith.addf %46, %52 : vector<16x32xf32>
    %54 = arith.addf %53, %2 : vector<16x32xf32>
    %cst_19 = arith.constant dense<0.000000e+00> : vector<16xf32>
    %55 = vector.multi_reduction <add>, %54, %cst_19 [1] : vector<16x32xf32> to vector<16xf32>
    %56 = vector.shape_cast %55 : vector<16xf32> to vector<16x1xf32>
    %cst_20 = arith.constant 3.200000e+01 : f32
    %57 = vector.broadcast %cst_20 : f32 to vector<16x1xf32>
    %58 = arith.divf %56, %57 : vector<16x1xf32>
    %59 = vector.broadcast %58 : vector<16x1xf32> to vector<16x32xf32>
    %60 = arith.subf %54, %59 : vector<16x32xf32>
    %61 = arith.mulf %60, %60 : vector<16x32xf32>
    %cst_21 = arith.constant dense<0.000000e+00> : vector<16xf32>
    %62 = vector.multi_reduction <add>, %61, %cst_21 [1] : vector<16x32xf32> to vector<16xf32>
    %63 = vector.shape_cast %62 : vector<16xf32> to vector<16x1xf32>
    %cst_22 = arith.constant 3.200000e+01 : f32
    %64 = vector.broadcast %cst_22 : f32 to vector<16x1xf32>
    %65 = arith.divf %63, %64 : vector<16x1xf32>
    %66 = vector.broadcast %58 : vector<16x1xf32> to vector<16x32xf32>
    %67 = arith.subf %54, %66 : vector<16x32xf32>
    %cst_23 = arith.constant 9.99999974E-6 : f32
    %68 = vector.broadcast %cst_23 : f32 to vector<16x1xf32>
    %69 = arith.addf %65, %68 : vector<16x1xf32>
    %70 = math.rsqrt %69 : vector<16x1xf32>
    %71 = vector.broadcast %70 : vector<16x1xf32> to vector<16x32xf32>
    %72 = arith.mulf %67, %71 : vector<16x32xf32>
    %73 = vector.broadcast %49 : vector<1x32xf32> to vector<16x32xf32>
    %74 = arith.mulf %72, %73 : vector<16x32xf32>
    %75 = vector.broadcast %50 : vector<1x32xf32> to vector<16x32xf32>
    %76 = arith.addf %74, %75 : vector<16x32xf32>
    %c0_24 = arith.constant 0 : index
    %c0_25 = arith.constant 0 : index
    %77 = vector.load %arg7[%c0_24, %c0_25] : memref<32x64xf32, #tpu.memory_space<vmem>>, vector<32x64xf32>
    %cst_26 = arith.constant dense<0.000000e+00> : vector<16x64xf32>
    %78 = tpu.matmul %76, %77, %cst_26 {dimension_numbers = #tpu.dot_dimension_numbers<[1], [0], [0], [1], [0, 0, 1, 1], [], []>} : vector<16x32xf32>, vector<32x64xf32>, vector<16x64xf32> -> vector<16x64xf32>
    %c0_27 = arith.constant 0 : index
    %c0_28 = arith.constant 0 : index
    %79 = vector.load %arg8[%c0_27, %c0_28] : memref<1x64xf32, #tpu.memory_space<vmem>>, vector<1x64xf32>
    %80 = vector.broadcast %79 : vector<1x64xf32> to vector<16x64xf32>
    %81 = arith.addf %78, %80 : vector<16x64xf32>
    %cst_29 = arith.constant 0.000000e+00 : f32
    %82 = vector.broadcast %cst_29 : f32 to vector<16x64xf32>
    %83 = arith.maximumf %81, %82 : vector<16x64xf32>
    %c0_30 = arith.constant 0 : index
    %c0_31 = arith.constant 0 : index
    %84 = vector.load %arg9[%c0_30, %c0_31] : memref<64x32xf32, #tpu.memory_space<vmem>>, vector<64x32xf32>
    %cst_32 = arith.constant dense<0.000000e+00> : vector<16x32xf32>
    %85 = tpu.matmul %83, %84, %cst_32 {dimension_numbers = #tpu.dot_dimension_numbers<[1], [0], [0], [1], [0, 0, 1, 1], [], []>} : vector<16x64xf32>, vector<64x32xf32>, vector<16x32xf32> -> vector<16x32xf32>
    %86 = vector.broadcast %51 : vector<1x32xf32> to vector<16x32xf32>
    %87 = arith.addf %85, %86 : vector<16x32xf32>
    %88 = vector.shape_cast %87 : vector<16x32xf32> to vector<2x8x32xf32>
    %c0_33 = arith.constant 0 : index
    %c0_34 = arith.constant 0 : index
    %c0_35 = arith.constant 0 : index
    %89 = vector.load %arg10[%c0_33, %c0_34, %c0_35] : memref<2x8x32xf32, #tpu.memory_space<vmem>>, vector<2x8x32xf32>
    tpu.vector_store %arg10[%c0_33, %c0_34, %c0_35], %88 {strides = array<i32>} : memref<2x8x32xf32, #tpu.memory_space<vmem>>, vector<2x8x32xf32>,
    return
  }
  func.func @transform_0(%arg0: i32) -> (i32, i32, i32) {
    %c0_i32 = arith.constant 0 : i32
    %c0_i32_0 = arith.constant 0 : i32
    %c0_i32_1 = arith.constant 0 : i32
    return %arg0, %c0_i32, %c0_i32_0 : i32, i32, i32
  }
  func.func @transform_1(%arg0: i32) -> (i32, i32, i32) {
    %c0_i32 = arith.constant 0 : i32
    %c0_i32_0 = arith.constant 0 : i32
    %c0_i32_1 = arith.constant 0 : i32
    return %arg0, %c0_i32, %c0_i32_0 : i32, i32, i32
  }
  func.func @transform_2(%arg0: i32) -> (i32, i32) {
    %c0_i32 = arith.constant 0 : i32
    %c0_i32_0 = arith.constant 0 : i32
    %c0_i32_1 = arith.constant 0 : i32
    return %c0_i32, %c0_i32_0 : i32, i32
  }
  func.func @transform_3(%arg0: i32) -> (i32, i32) {
    %c0_i32 = arith.constant 0 : i32
    %c0_i32_0 = arith.constant 0 : i32
    %c0_i32_1 = arith.constant 0 : i32
    return %c0_i32, %c0_i32_0 : i32, i32
  }
  func.func @transform_4(%arg0: i32) -> (i32, i32) {
    %c0_i32 = arith.constant 0 : i32
    %c0_i32_0 = arith.constant 0 : i32
    %c0_i32_1 = arith.constant 0 : i32
    return %c0_i32, %c0_i32_0 : i32, i32
  }
  func.func @transform_5(%arg0: i32) -> (i32, i32) {
    %c0_i32 = arith.constant 0 : i32
    %c0_i32_0 = arith.constant 0 : i32
    %c0_i32_1 = arith.constant 0 : i32
    return %c0_i32, %c0_i32_0 : i32, i32
  }
  func.func @transform_6(%arg0: i32) -> (i32, i32) {
    %c0_i32 = arith.constant 0 : i32
    %c0_i32_0 = arith.constant 0 : i32
    %c0_i32_1 = arith.constant 0 : i32
    return %c0_i32, %c0_i32_0 : i32, i32
  }
  func.func @transform_7(%arg0: i32) -> (i32, i32) {
    %c0_i32 = arith.constant 0 : i32
    %c0_i32_0 = arith.constant 0 : i32
    %c0_i32_1 = arith.constant 0 : i32
    return %c0_i32, %c0_i32_0 : i32, i32
  }
  func.func @transform_8(%arg0: i32) -> (i32, i32) {
    %c0_i32 = arith.constant 0 : i32
    %c0_i32_0 = arith.constant 0 : i32
    %c0_i32_1 = arith.constant 0 : i32
    return %c0_i32, %c0_i32_0 : i32, i32
  }
  func.func @transform_9(%arg0: i32) -> (i32, i32, i32) {
    %c0_i32 = arith.constant 0 : i32
    %c0_i32_0 = arith.constant 0 : i32
    %c0_i32_1 = arith.constant 0 : i32
    return %arg0, %c0_i32, %c0_i32_0 : i32, i32, i32
  }
}

</mosaic_0001>

<bundles_post_ra>
// kernel: tpu_custom_call.1
= control target key start
LH: loop header
LB: loop body
LE: loop exit
PB: predicated region body
PF: predicated region fallthrough
CT: control target
= control target key end

     0   :  { %14 = vsyncpa [#allocation3], 0  ;;  %s2693_s0 = inlined_call_operand.hbm [shape: f32[2,8,32], index: 0, kind: input, shape index: {}]   ;;  %s2694_s1 = inlined_call_operand.hbm [shape: f32[2,1,8], index: 1, kind: input, shape index: {}]   ;;  %s2695_s2 = inlined_call_operand.vmem [shape: f32[32,96], index: 2, kind: input, shape index: {}]   ;;  %s2696_s3 = inlined_call_operand.vmem [shape: f32[1,96], index: 3, kind: input, shape index: {}]   ;;  %s2697_s4 = inlined_call_operand.vmem [shape: f32[32,32], index: 4, kind: input, shape index: {}]   ;;  %s2698_s5 = inlined_call_operand.hbm [shape: f32[4,32], index: 5, kind: input, shape index: {}]   ;;  %s2699_s6 = inlined_call_operand.vmem [shape: f32[32,64], index: 6, kind: input, shape index: {}]   ;;  %s2700_s7 = inlined_call_operand.vmem [shape: f32[1,64], index: 7, kind: input, shape index: {}]   ;;  %s2701_s8 = inlined_call_operand.vmem [shape: f32[64,32], index: 8, kind: input, shape index: {}]   ;;  %s2702_s9 = inlined_call_operand.hbm [shape: f32[2,8,32], index: 9, kind: output, shape index: {}]  }
   0x1   :  { %15 = vsyncpa [#allocation6], 0  ;;  %s34_s11 = sshll.u32 %s2694_s1, 4  ;;  %s35_s11 = int_to_ptr.hbm [resolvable:$true] %s34_s11 }
   0x2   :  { %16 = vsyncpa [#allocation4], 0  ;;  %s2021_s12 = smov [#allocation5]   ;;  %s21_s16 = sshll.u32 %s2693_s0, 4  ;;  %s22_s16 = int_to_ptr.hbm [resolvable:$true] %s21_s16 }
   0x3   :  { %s36_s13 = sshll.u32 %s2021_s12, 4  ;;  %s2022_s17 = smov 16   ;;  %s37_s13 = int_to_ptr.vmem [resolvable:$true] %s36_s13 }
   0x4   :  { %s2023_s18 = smov 1   ;;  %s2024_s19 = smov [#allocation2]  }
   0x5   :  { %42 = dma.hbm_to_vmem [thread:$0]  %s35_s11, 32, %s37_s13, [#allocation6], %s2022_s17, %s2022_s17, %s2023_s18  }
   0x6   :  { %s23_s20 = sshll.u32 %s2024_s19, 4  ;;  %s2025_s21 = smov 128   ;;  %s24_s20 = int_to_ptr.vmem [resolvable:$true] %s23_s20 }
   0x7   :  { %s2026_s1 = smov 8   ;;  %s54_s24 = sshll.u32 %s2698_s5, 4  ;;  %s55_s24 = int_to_ptr.hbm [resolvable:$true] %s54_s24 }
   0x8   :  { %29 = dma.hbm_to_vmem [thread:$0]  %s22_s16, 256, %s24_s20, [#allocation3], %s2025_s21, %s2025_s21, %s2026_s1  }
   0x9   :  { %s2027_s0 = smov [#allocation7]  }
   0xa   :  { %s56_s25 = sshll.u32 %s2027_s0, 4  ;;  %s57_s25 = int_to_ptr.vmem [resolvable:$true] %s56_s25 }
   0xb   :  { %59 = dma.hbm_to_vmem [thread:$0]  %s55_s24, 64, %s57_s25, [#allocation6]  }
   0xc   :  { %2015 = dma.done.wait [#allocation3], 256  }
   0xd   :  { %2016 = vsyncadd [#allocation3], 4294967040 }
   0xe   :  { %2017 = dma.done.wait [#allocation6], 96  }
   0xf   :  { %2018 = vsyncadd [#allocation6], 4294967200  ;;  %v85_v0 = vld [vmem:[%s2695_s2 + $0x18] sm:$0xff]  ;;  %v84_v1 = vld [vmem:[%s2695_s2 + $0x10] sm:$0xff]  ;;  %vm90_vm0 = vcmask 261120   ;;  %s2028_s14 = smov 104  }
  0x10   :  { %109 = vmatpush.msra.mxu0 %v85_v0  ;;  %v83_v2 = vld [vmem:[%s2695_s2 + $0x8] sm:$0xff]  ;;  %v82_v3 = vld [vmem:[%s2695_s2] sm:$0xff]  ;;  %s2029_s15 = smov 120   ;;  %s2030_s2 = smov 112   ;;  %v2032_v13 = vmov 1983009808  }
  0x11   :  { %v78_v4 = vld [vmem:[#allocation2] sm:$0xff]  ;;  %v79_v5 = vld [vmem:[#allocation2 + $0x8] sm:$0xff]  ;;  %s2031_s16 = smov 96   ;;  %v146_v14 = vunpack.c.l.s4 %v2032_v13  ;;  %vm141_vm1 = vcmask 1047556   ;;  %v2033_v22 = vmov 1934713408  }
  0x12   :  { %110 = vmatpush.msra.mxu0 %v84_v1  ;;  %v1875_v6 = vld [vmem:[%s2696_s3] ss:$0 sm:$0xff]  ;;  %v170_v23 = vunpack.c.l.s4 %v2033_v22  ;;  %s2034_s3 = smov 64   ;;  %vm855_vm2 = vcmask 64512   ;;  %s2035_s18 = smov 24   ;;  %vm1606_vm3 = vcmask 130048  }
  0x13   :  { %v2134_v19 = vunpack.c.0.s8 %v146_v14  ;;  %vm1609_vm4 = vcmask 195584   ;;  %vm1754_vm12 = vcmask 523264  }
  0x14   :  { %111 = vmatpush.msra.mxu0 %v83_v2  ;;  %v2154_v32 = vunpack.c.0.s8 %v170_v23 }
  0x16   :  { %112 = vmatpush.msra.mxu0 %v82_v3 }
  0x17   :  { %1806 = vmatmul.msk.f32.vlgmr.msra.gmra.mxu0 %vm90_vm0, %v78_v4 }
  0x1f   :  { %1807 = vmatmul.msk.f32.gmra.mxu0 %vm90_vm0, %v79_v5 }
  0x94   :  { %v114_v7 = vpop.f32.mrf.mxu0 }
  0x95   :  { %v115_v8 = vadd.f32 %v1875_v6, %v114_v7 }
  0x97   :  { %134 = vrot.lane.b32.xlu1 %v115_v8, %s2028_s14  ;;  %122 = vrot.lane.b32.xlu0 %v115_v8, %s2029_s15  ;;  %v143_v24 = vrot.slane %v115_v8, 4 }
  0x9c   :  { %v117_v9 = vpop.f32.mrf.mxu0 }
  0x9d   :  { %v2119_v10 = vadd.f32 %v1875_v6, %v117_v9 }
  0x9f   :  { %130 = vrot.lane.b32.xlu2 %v2119_v10, %s2030_s2  ;;  %124 = vrot.lane.b32.xlu1 %v2119_v10, %s2029_s15 }
  0xa0   :  { %128 = vrot.lane.b32.xlu0 %v115_v8, %s2030_s2 }
  0xa7   :  { %136 = vrot.lane.b32.xlu2 %v2119_v10, %s2028_s14 }
  0xa8   :  { %361 = vrot.lane.b32.xlu0 %v115_v8, %s2031_s16 }
  0xf9   :  { %v2137_v21 = vpop.permute.xlu2 %130 }
 0x101   :  { %v2160_v40 = vpop.permute.xlu2 %136 }
 0x109   :  { %v2125_v11 = vpop.permute.xlu1 %134  ;;  %v123_v12 = vpop.permute.xlu0 %122 }
 0x10a   :  { %v153_v15 = vrot.slane %v2125_v11, 4  ;;  %v155_v16 = vrot.slane %v123_v12, 4  ;;  %373 = vrot.lane.b32.xlu0 %v2125_v11, %s2031_s16  ;;  %365 = vrot.lane.b32.xlu1 %v123_v12, %s2031_s16  ;;  %v1855_v39 = vpack.i.bf16 %v123_v12, %v115_v8 }
 0x10c   :  { %v154_v17 = vsel %vm141_vm1, %v153_v15, %v123_v12  ;;  %v156_v18 = vsel %vm141_vm1, %v2125_v11, %v155_v16 }
 0x10d   :  { %v164_v20 = vperm.slane %v156_v18, %v2134_v19  ;;  %v160_v25 = vperm.slane %v154_v17, %v2134_v19 }
 0x10f   :  { %v177_v30 = vrot.slane %v164_v20, 4  ;;  %v165_v34 = vrot.slane %v160_v25, 4 }
 0x111   :  { %v2164_v44 = vpop.permute.xlu1 %124 }
 0x112   :  { %v2140_v26 = vpop.permute.xlu0 %128  ;;  %371 = vrot.lane.b32.xlu0 %v2137_v21, %s2031_s16  ;;  %363 = vrot.lane.b32.xlu1 %v2119_v10, %s2031_s16 }
 0x113   :  { %v140_v27 = vrot.slane %v2140_v26, 4  ;;  %v144_v28 = vsel %vm141_vm1, %v2140_v26, %v143_v24  ;;  %369 = vrot.lane.b32.xlu2 %v2140_v26, %s2031_s16  ;;  %v1860_v29 = vpack.i.bf16 %v2125_v11, %v2140_v26 }
 0x114   :  { %v152_v31 = vperm.slane %v144_v28, %v2134_v19  ;;  %v197_v28 = vrot.slane %v2137_v21, 4 }
 0x115   :  { %v142_v33 = vsel %vm141_vm1, %v140_v27, %v115_v8 }
 0x116   :  { %v148_v35 = vperm.slane %v142_v33, %v2134_v19  ;;  %v178_v36 = vsel %vm141_vm1, %v177_v30, %v152_v31  ;;  %v179_v37 = vrot.slane %v152_v31, 4  ;;  %v209_v30 = vrot.slane %v2160_v40, 4 }
 0x117   :  { %v184_v43 = vperm.slane %v178_v36, %v2154_v32  ;;  %v211_v31 = vrot.slane %v2164_v44, 4  ;;  %v198_v33 = vsel %vm141_vm1, %v197_v28, %v2119_v10 }
 0x118   :  { %v166_v38 = vsel %vm141_vm1, %v165_v34, %v148_v35  ;;  %v167_v41 = vrot.slane %v148_v35, 4  ;;  %v180_v42 = vsel %vm141_vm1, %v164_v20, %v179_v37  ;;  %v199_v34 = vrot.slane %v2119_v10, 4 }
 0x119   :  { %v172_v45 = vperm.slane %v166_v38, %v2154_v32  ;;  %v188_v47 = vperm.slane %v180_v42, %v2154_v32  ;;  %v193_v49 = vrot.slane %v184_v43, 4  ;;  %v210_v36 = vsel %vm141_vm1, %v209_v30, %v2164_v44 }
 0x11a   :  { %1856 = vrot.lane.b32.xlu0 %v1855_v39, %s2034_s3  ;;  %375 = vrot.lane.b32.xlu1 %v2160_v40, %s2031_s16  ;;  %v168_v46 = vsel %vm141_vm1, %v160_v25, %v167_v41  ;;  %v200_v35 = vsel %vm141_vm1, %v2137_v21, %v199_v34  ;;  %v204_v37 = vperm.slane %v198_v33, %v2134_v19 }
 0x11b   :  { %367 = vrot.lane.b32.xlu2 %v2164_v44, %s2031_s16  ;;  %v176_v48 = vperm.slane %v168_v46, %v2154_v32  ;;  %v195_v50 = vrot.slane %v188_v47, 4  ;;  %v189_v51 = vrot.slane %v172_v45, 4  ;;  %v194_v59 = vsel %vm141_vm1, 0.0, %v193_v49 }
 0x11c   :  { %v212_v38 = vsel %vm141_vm1, %v2160_v40, %v211_v31  ;;  %v208_v39 = vperm.slane %v200_v35, %v2134_v19  ;;  %v216_v41 = vperm.slane %v210_v36, %v2134_v19 }
 0x11d   :  { %v191_v52 = vrot.slane %v176_v48, 4  ;;  %v196_v53 = vsel %vm141_vm1, 0.0, %v195_v50  ;;  %v264_v54 = vsel %vm141_vm1, %v195_v50, %v184_v43  ;;  %v190_v62 = vsel %vm141_vm1, 0.0, %v189_v51 }
 0x11e   :  { %v269_v55 = vrot.slane %v196_v53, 4  ;;  %v268_v58 = vperm.slane %v264_v54, %v2134_v19  ;;  %v220_v42 = vperm.slane %v212_v38, %v2134_v19  ;;  %v223_v43 = vrot.slane %v204_v37, 4 }
 0x11f   :  { %v192_v56 = vsel %vm141_vm1, 0.0, %v191_v52  ;;  %v253_v57 = vsel %vm141_vm1, %v191_v52, %v172_v45  ;;  %v235_v45 = vrot.slane %v208_v39, 4  ;;  %v221_v46 = vrot.slane %v216_v41, 4 }
 0x120   :  { %v257_v60 = vperm.slane %v253_v57, %v2134_v19  ;;  %v258_v61 = vrot.slane %v192_v56, 4  ;;  %v270_v63 = vsel %vm141_vm1, %v269_v55, %v194_v59  ;;  %v289_v0 = vrot.slane %v268_v58, 4  ;;  %v362_v55 = vpop.permute.xlu0 %361 }
 0x121   :  { %v274_v2 = vperm.slane %v270_v63, %v2134_v19  ;;  %v224_v47 = vsel %vm141_vm1, %v216_v41, %v223_v43  ;;  %v233_v48 = vrot.slane %v220_v42, 4  ;;  %v236_v49 = vsel %vm141_vm1, %v220_v42, %v235_v45 }
 0x122   :  { %v259_v1 = vsel %vm141_vm1, %v258_v61, %v190_v62  ;;  %v277_v3 = vrot.slane %v257_v60, 4  ;;  %v232_v50 = vperm.slane %v224_v47, %v2154_v32  ;;  %v222_v52 = vsel %vm141_vm1, %v221_v46, %v204_v37 }
 0x123   :  { %v263_v4 = vperm.slane %v259_v1, %v2134_v19  ;;  %v290_v5 = vsel %vm141_vm1, %v274_v2, %v289_v0  ;;  %v287_v6 = vrot.slane %v274_v2, 4  ;;  %v234_v53 = vsel %vm141_vm1, %v233_v48, %v208_v39 }
 0x124   :  { %v298_v8 = vperm.slane %v290_v5, %v2154_v32  ;;  %v244_v54 = vperm.slane %v236_v49, %v2154_v32  ;;  %v228_v57 = vperm.slane %v222_v52, %v2154_v32  ;;  %v240_v59 = vperm.slane %v234_v53, %v2154_v32 }
 0x125   :  { %v278_v7 = vsel %vm141_vm1, %v263_v4, %v277_v3  ;;  %v275_v9 = vrot.slane %v263_v4, 4  ;;  %v288_v13 = vsel %vm141_vm1, %v287_v6, %v268_v58  ;;  %v247_v58 = vrot.slane %v232_v50, 4 }
 0x126   :  { %v286_v12 = vperm.slane %v278_v7, %v2154_v32  ;;  %v303_v14 = vrot.slane %v298_v8, 4  ;;  %v294_v16 = vperm.slane %v288_v13, %v2154_v32  ;;  %v251_v61 = vrot.slane %v244_v54, 4 }
 0x127   :  { %v276_v15 = vsel %vm141_vm1, %v275_v9, %v257_v60  ;;  %v387_v60 = vrot.slane %v362_v55, 4  ;;  %v245_v0 = vrot.slane %v228_v57, 4  ;;  %v248_v1 = vsel %vm141_vm1, 0.0, %v247_v58 }
 0x128   :  { %v305_v17 = vrot.slane %v286_v12, 4  ;;  %v282_v18 = vperm.slane %v276_v15, %v2154_v32  ;;  %v2196_v20 = vsel %vm141_vm1, %v303_v14, %v286_v12  ;;  %v299_v22 = vrot.slane %v294_v16, 4 }
 0x129   :  { %v249_v2 = vrot.slane %v240_v59, 4  ;;  %v252_v3 = vsel %vm141_vm1, 0.0, %v251_v61  ;;  %v246_v13 = vsel %vm141_vm1, 0.0, %v245_v0  ;;  %v318_v14 = vsel %vm141_vm1, %v251_v61, %v240_v59 }
 0x12a   :  { %v2199_v23 = vsel %vm141_vm1, %v298_v8, %v305_v17  ;;  %v301_v24 = vrot.slane %v282_v18, 4  ;;  %v2202_v25 = vsel %vm141_vm1, %v299_v22, %v282_v18  ;;  %v312_v8 = vrot.slane %v248_v1, 4 }
 0x12b   :  { %v323_v15 = vrot.slane %v252_v3, 4  ;;  %v250_v18 = vsel %vm141_vm1, 0.0, %v249_v2  ;;  %v307_v31 = vsel %vm141_vm1, %v247_v58, %v228_v57  ;;  %v2247_v34 = vperm.slane %v318_v14, %v2134_v19 }
 0x12c   :  { %v2205_v27 = vsel %vm141_vm1, %v294_v16, %v301_v24  ;;  %v313_v33 = vsel %vm141_vm1, %v312_v8, %v246_v13  ;;  %v2257_v48 = vperm.slane %v307_v31, %v2134_v19 }
 0x12d   :  { %v324_v42 = vsel %vm141_vm1, %v323_v15, %v250_v18  ;;  %v2260_v49 = vperm.slane %v313_v33, %v2134_v19  ;;  %v343_v58 = vrot.slane %v2247_v34, 4 }
 0x12e   :  { %v2265_v57 = vperm.slane %v324_v42, %v2134_v19 }
 0x130   :  { %v344_v33 = vsel %vm141_vm1, %v2265_v57, %v343_v58 }
 0x16d   :  { %v370_v51 = vpop.permute.xlu2 %369 }
 0x16e   :  { %v385_v56 = vrot.slane %v370_v51, 4  ;;  %v388_v63 = vsel %vm141_vm1, %v370_v51, %v387_v60 }
 0x16f   :  { %v396_v5 = vperm.slane %v388_v63, %v2134_v19 }
 0x170   :  { %v386_v62 = vsel %vm141_vm1, %v385_v56, %v362_v55 }
 0x171   :  { %v392_v4 = vperm.slane %v386_v62, %v2134_v19  ;;  %v423_v24 = vrot.slane %v396_v5, 4 }
 0x173   :  { %v411_v22 = vrot.slane %v392_v4, 4 }
 0x175   :  { %v368_v55 = vpop.permute.xlu2 %367 }
 0x17c   :  { %v366_v6 = vpop.permute.xlu1 %365  ;;  %v374_v7 = vpop.permute.xlu0 %373 }
 0x17d   :  { %v399_v9 = vrot.slane %v366_v6, 4  ;;  %v397_v12 = vrot.slane %v374_v7, 4 }
 0x17f   :  { %v398_v16 = vsel %vm141_vm1, %v397_v12, %v366_v6  ;;  %v400_v17 = vsel %vm141_vm1, %v374_v7, %v399_v9 }
 0x180   :  { %v404_v28 = vperm.slane %v398_v16, %v2134_v19  ;;  %v408_v30 = vperm.slane %v400_v17, %v2134_v19 }
 0x182   :  { %v409_v35 = vrot.slane %v404_v28, 4  ;;  %v412_v36 = vsel %vm141_vm1, %v404_v28, %v411_v22  ;;  %v421_v37 = vrot.slane %v408_v30, 4  ;;  %v424_v38 = vsel %vm141_vm1, %v408_v30, %v423_v24 }
 0x183   :  { %v420_v39 = vperm.slane %v412_v36, %v2154_v32  ;;  %v432_v41 = vperm.slane %v424_v38, %v2154_v32  ;;  %v329_v22 = vrot.slane %v2260_v49, 4  ;;  %v331_v24 = vrot.slane %v2257_v48, 4 }
 0x184   :  { %v410_v43 = vsel %vm141_vm1, %v409_v35, %v392_v4  ;;  %v422_v45 = vsel %vm141_vm1, %v421_v37, %v396_v5  ;;  %v364_v46 = vpop.permute.xlu1 %363  ;;  %v372_v47 = vpop.permute.xlu0 %371  ;;  %v455_v4 = vrot.slane %v368_v55, 4 }
 0x185   :  { %v416_v50 = vperm.slane %v410_v43, %v2154_v32  ;;  %v428_v51 = vperm.slane %v422_v45, %v2154_v32  ;;  %v435_v52 = vrot.slane %v420_v39, 4  ;;  %v439_v53 = vrot.slane %v432_v41, 4 }
 0x186   :  { %v443_v54 = vrot.slane %v364_v46, 4  ;;  %v441_v56 = vrot.slane %v372_v47, 4 }
 0x187   :  { %v436_v59 = vsel %vm141_vm1, 0.0, %v435_v52  ;;  %v437_v60 = vrot.slane %v428_v51, 4  ;;  %v440_v61 = vsel %vm141_vm1, 0.0, %v439_v53  ;;  %v508_v62 = vsel %vm141_vm1, %v439_v53, %v428_v51 }
 0x188   :  { %v502_v63 = vrot.slane %v436_v59, 4  ;;  %v512_v0 = vperm.slane %v508_v62, %v2134_v19  ;;  %v513_v1 = vrot.slane %v440_v61, 4  ;;  %v442_v2 = vsel %vm141_vm1, %v441_v56, %v364_v46 }
 0x189   :  { %v438_v3 = vsel %vm141_vm1, 0.0, %v437_v60  ;;  %v444_v5 = vsel %vm141_vm1, %v372_v47, %v443_v54  ;;  %v433_v6 = vrot.slane %v416_v50, 4  ;;  %v497_v8 = vsel %vm141_vm1, %v435_v52, %v416_v50 }
 0x18a   :  { %v452_v7 = vperm.slane %v444_v5, %v2134_v19  ;;  %v514_v9 = vsel %vm141_vm1, %v513_v1, %v438_v3  ;;  %v533_v12 = vrot.slane %v512_v0, 4  ;;  %v448_v13 = vperm.slane %v442_v2, %v2134_v19 }
 0x18b   :  { %v434_v14 = vsel %vm141_vm1, 0.0, %v433_v6  ;;  %v501_v15 = vperm.slane %v497_v8, %v2134_v19  ;;  %v518_v16 = vperm.slane %v514_v9, %v2134_v19 }
 0x18c   :  { %v376_v17 = vpop.permute.xlu1 %375  ;;  %v503_v18 = vsel %vm141_vm1, %v502_v63, %v434_v14  ;;  %v479_v28 = vrot.slane %v452_v7, 4  ;;  %v467_v39 = vrot.slane %v448_v13, 4 }
 0x18d   :  { %v453_v30 = vrot.slane %v376_v17, 4  ;;  %v456_v31 = vsel %vm141_vm1, %v376_v17, %v455_v4  ;;  %v507_v36 = vperm.slane %v503_v18, %v2134_v19  ;;  %v521_v37 = vrot.slane %v501_v15, 4 }
 0x18e   :  { %v464_v35 = vperm.slane %v456_v31, %v2134_v19  ;;  %v534_v38 = vsel %vm141_vm1, %v518_v16, %v533_v12  ;;  %v531_v58 = vrot.slane %v518_v16, 4 }
 0x18f   :  { %v454_v41 = vsel %vm141_vm1, %v453_v30, %v368_v55  ;;  %v542_v42 = vperm.slane %v534_v38, %v2154_v32  ;;  %v522_v47 = vsel %vm141_vm1, %v507_v36, %v521_v37  ;;  %v519_v53 = vrot.slane %v507_v36, 4 }
 0x190   :  { %v460_v43 = vperm.slane %v454_v41, %v2134_v19  ;;  %v477_v45 = vrot.slane %v464_v35, 4  ;;  %v480_v46 = vsel %vm141_vm1, %v464_v35, %v479_v28  ;;  %v530_v51 = vperm.slane %v522_v47, %v2154_v32 }
 0x191   :  { %v488_v50 = vperm.slane %v480_v46, %v2154_v32  ;;  %v547_v52 = vrot.slane %v542_v42, 4  ;;  %v520_v2 = vsel %vm141_vm1, %v519_v53, %v501_v15  ;;  %v532_v3 = vsel %vm141_vm1, %v531_v58, %v512_v0 }
 0x192   :  { %v465_v54 = vrot.slane %v460_v43, 4  ;;  %v468_v56 = vsel %vm141_vm1, %v460_v43, %v467_v39  ;;  %v478_v55 = vsel %vm141_vm1, %v477_v45, %v452_v7  ;;  %v549_v1 = vrot.slane %v530_v51, 4 }
 0x193   :  { %v476_v59 = vperm.slane %v468_v56, %v2154_v32  ;;  %v484_v60 = vperm.slane %v478_v55, %v2154_v32  ;;  %v495_v61 = vrot.slane %v488_v50, 4  ;;  %v548_v62 = vsel %vm141_vm1, %v547_v52, %v530_v51 }
 0x194   :  { %v466_v63 = vsel %vm141_vm1, %v465_v54, %v448_v13  ;;  %1812 = vmatpush.xpose.msk.msra.mxu3 %vm855_vm2, %v548_v62  ;;  %v550_v12 = vsel %vm141_vm1, %v542_v42, %v549_v1  ;;  %v526_v13 = vperm.slane %v520_v2, %v2154_v32  ;;  %v538_v18 = vperm.slane %v532_v3, %v2154_v32 }
 0x195   :  { %v472_v4 = vperm.slane %v466_v63, %v2154_v32  ;;  %v491_v5 = vrot.slane %v476_v59, 4  ;;  %v493_v6 = vrot.slane %v484_v60, 4  ;;  %v496_v7 = vsel %vm141_vm1, 0.0, %v495_v61  ;;  %1814 = vmatpush.xpose.msk.msra.mxu1 %vm855_vm2, %v550_v12 }
 0x196   :  { %v562_v8 = vsel %vm141_vm1, %v495_v61, %v484_v60  ;;  %v567_v9 = vrot.slane %v496_v7, 4  ;;  %v545_v28 = vrot.slane %v526_v13, 4  ;;  %v543_v38 = vrot.slane %v538_v18, 4 }
 0x197   :  { %v489_v14 = vrot.slane %v472_v4, 4  ;;  %v492_v16 = vsel %vm141_vm1, 0.0, %v491_v5  ;;  %v494_v15 = vsel %vm141_vm1, 0.0, %v493_v6  ;;  %v566_v0 = vperm.slane %v562_v8, %v2134_v19  ;;  %1813 = vmatmul.msk.f32.vlgmr.msra.gmra.mxu3 %vm855_vm2, %v2196_v20 }
 0x198   :  { %v556_v17 = vrot.slane %v492_v16, 4  ;;  %v551_v30 = vsel %vm141_vm1, %v491_v5, %v472_v4  ;;  %v568_v36 = vsel %vm141_vm1, %v567_v9, %v494_v15  ;;  %1815 = vmatmul.msk.f32.vlgmr.msra.gmra.mxu1 %vm855_vm2, %v2199_v23  ;;  %v341_v41 = vrot.slane %v2265_v57, 4 }
 0x199   :  { %v490_v31 = vsel %vm141_vm1, 0.0, %v489_v14  ;;  %v555_v35 = vperm.slane %v551_v30, %v2134_v19  ;;  %v587_v37 = vrot.slane %v566_v0, 4  ;;  %v572_v20 = vperm.slane %v568_v36, %v2134_v19 }
 0x19a   :  { %v557_v39 = vsel %vm141_vm1, %v556_v17, %v490_v31  ;;  %v546_v42 = vsel %vm141_vm1, %v538_v18, %v545_v28  ;;  %v352_v46 = vperm.slane %v344_v33, %v2154_v32  ;;  %v544_v47 = vsel %vm141_vm1, %v543_v38, %v526_v13  ;;  %v1876_v13 = vld [vmem:[#allocation5] ss:$0 sm:$0xff]  ;;  %v1877_v18 = vld [vmem:[#allocation5 + $0x1] ss:$0 sm:$0xff] }
 0x19b   :  { %v561_v43 = vperm.slane %v557_v39, %v2134_v19  ;;  %v575_v45 = vrot.slane %v555_v35, 4  ;;  %v585_v50 = vrot.slane %v572_v20, 4  ;;  %v588_v51 = vsel %vm141_vm1, %v572_v20, %v587_v37  ;;  %1808 = vmatpush.xpose.msk.msra.mxu2 %vm855_vm2, %v544_v47 }
 0x19c   :  { %v330_v23 = vsel %vm141_vm1, %v329_v22, %v2257_v48  ;;  %v596_v53 = vperm.slane %v588_v51, %v2154_v32  ;;  %v332_v56 = vsel %vm141_vm1, %v2260_v49, %v331_v24  ;;  %v357_v61 = vrot.slane %v352_v46, 4 }
 0x19d   :  { %v573_v57 = vrot.slane %v561_v43, 4  ;;  %v576_v52 = vsel %vm141_vm1, %v561_v43, %v575_v45  ;;  %v586_v54 = vsel %vm141_vm1, %v585_v50, %v566_v0  ;;  %v336_v59 = vperm.slane %v330_v23, %v2154_v32 }
 0x19e   :  { %v584_v33 = vperm.slane %v576_v52, %v2154_v32  ;;  %v601_v55 = vrot.slane %v596_v53, 4  ;;  %v592_v58 = vperm.slane %v586_v54, %v2154_v32  ;;  %1809 = vmatmul.msk.f32.vlgmr.msra.gmra.mxu2 %vm855_vm2, %v2202_v25  ;;  %v342_v62 = vsel %vm141_vm1, %v341_v41, %v2247_v34 }
 0x19f   :  { %1810 = vmatpush.xpose.msk.msrb.mxu2 %vm855_vm2, %v546_v42  ;;  %v574_v22 = vsel %vm141_vm1, %v573_v57, %v555_v35  ;;  %v340_v24 = vperm.slane %v332_v56, %v2154_v32  ;;  %v348_v3 = vperm.slane %v342_v62, %v2154_v32  ;;  %v355_v25 = vrot.slane %v336_v59, 4 }
 0x1a0   :  { %v580_v60 = vperm.slane %v574_v22, %v2154_v32  ;;  %v602_v48 = vsel %vm141_vm1, %v601_v55, %v584_v33  ;;  %v597_v63 = vrot.slane %v592_v58, 4  ;;  %v603_v49 = vrot.slane %v584_v33, 4 }
 0x1a1   :  { %1820 = vmatpush.xpose.msk.msrb.mxu1 %vm855_vm2, %v602_v48  ;;  %v358_v4 = vsel %vm141_vm1, %v357_v61, %v340_v24  ;;  %v356_v6 = vsel %vm141_vm1, %v348_v3, %v355_v25  ;;  %v353_v7 = vrot.slane %v348_v3, 4  ;;  %v359_v9 = vrot.slane %v340_v24, 4 }
 0x1a2   :  { %v599_v1 = vrot.slane %v580_v60, 4  ;;  %v598_v2 = vsel %vm141_vm1, %v597_v63, %v580_v60  ;;  %v604_v5 = vsel %vm141_vm1, %v596_v53, %v603_v49  ;;  %v1870_v57 = vpack.i.bf16 %v2160_v40, %v2137_v21  ;;  %v2396_v53 = vpop.permute.xlu0 %1856 }
 0x1a3   :  { %1816 = vmatpush.xpose.msk.msra.mxu2 %vm855_vm2, %v598_v2  ;;  %v354_v8 = vsel %vm141_vm1, %v353_v7, %v336_v59  ;;  %v360_v12 = vsel %vm141_vm1, %v352_v46, %v359_v9  ;;  %v1865_v52 = vpack.i.bf16 %v2164_v44, %v2119_v10  ;;  %v1859_v25 = vunpack.i.h.bf16 %v2396_v53 }
 0x1a4   :  { %v600_v34 = vsel %vm141_vm1, %v592_v58, %v599_v1  ;;  %1821 = vmatmul.msk.f32.vlgmr.msrb.gmra.mxu1 %vm855_vm2, %v358_v4  ;;  %v1858_v4 = vunpack.i.l.bf16 %v2396_v53 }
 0x1a5   :  { %1818 = vmatpush.xpose.msk.msrb.mxu3 %vm855_vm2, %v600_v34  ;;  %v643_v7 = vrot.slane %v1859_v25, 4 }
 0x1a6   :  { %1811 = vmatmul.msk.f32.vlgmr.msrb.gmra.mxu2 %vm855_vm2, %v2205_v27 }
 0x1a7   :  { %1822 = vmatpush.xpose.msk.msrb.mxu2 %vm855_vm2, %v604_v5 }
 0x1a8   :  { %1819 = vmatmul.msk.f32.vlgmr.msrb.gmra.mxu3 %vm855_vm2, %v356_v6 }
 0x1ae   :  { %1817 = vmatmul.msk.f32.vlgmr.msra.gmra.mxu2 %vm855_vm2, %v354_v8 }
 0x1b6   :  { %1823 = vmatmul.msk.f32.vlgmr.msrb.gmra.mxu2 %vm855_vm2, %v360_v12 }
 0x215   :  { %v957_v14 = vpop.f32.mrf.mxu1 }
 0x216   :  { %v958_v16 = vadd.f32 %v1876_v13, %v957_v14 }
 0x218   :  { %v1073_v15 = vsel %vm855_vm2, %v958_v16, -inf }
 0x219   :  { %1074 = vmax.xlane.f32.xlu0 %v1073_v15 }
 0x21a   :  { %v931_v27 = vpop.f32.mrf.mxu3 }
 0x21b   :  { %v932_v0 = vadd.f32 %v1876_v13, %v931_v27 }
 0x21d   :  { %v1070_v17 = vsel %vm855_vm2, %v932_v0, -inf }
 0x21e   :  { %1071 = vmax.xlane.f32.xlu1 %v1070_v17 }
 0x221   :  { %v1035_v28 = vpop.f32.mrf.mxu1  ;;  %v879_v30 = vpop.f32.mrf.mxu2 }
 0x222   :  { %v1036_v31 = vadd.f32 %v1877_v18, %v1035_v28  ;;  %v880_v35 = vadd.f32 %v1876_v13, %v879_v30 }
 0x224   :  { %v1082_v36 = vsel %vm855_vm2, %v1036_v31, -inf  ;;  %v1064_v37 = vsel %vm855_vm2, %v880_v35, -inf }
 0x225   :  { %1065 = vmax.xlane.f32.xlu2 %v1064_v37 }
 0x226   :  { %1083 = vmax.xlane.f32.xlu1 %v1082_v36 }
 0x229   :  { %v905_v38 = vpop.f32.mrf.mxu2 }
 0x22a   :  { %v906_v39 = vadd.f32 %v1876_v13, %v905_v38  ;;  %v631_v13 = vrot.slane %v1858_v4, 4 }
 0x22b   :  { %v1009_v20 = vpop.f32.mrf.mxu3 }
 0x22c   :  { %v1067_v41 = vsel %vm855_vm2, %v906_v39, -inf  ;;  %v2380_v42 = vadd.f32 %v1877_v18, %v1009_v20 }
 0x22d   :  { %1068 = vmax.xlane.f32.xlu2 %v1067_v41 }
 0x22e   :  { %v1079_v45 = vsel %vm855_vm2, %v2380_v42, -inf }
 0x231   :  { %v983_v43 = vpop.f32.mrf.mxu2 }
 0x232   :  { %v984_v46 = vadd.f32 %v1877_v18, %v983_v43 }
 0x234   :  { %v1076_v23 = vsel %vm855_vm2, %v984_v46, -inf }
 0x235   :  { %1080 = vmax.xlane.f32.xlu2 %v1079_v45 }
 0x239   :  { %v1061_v47 = vpop.f32.mrf.mxu2 }
 0x23a   :  { %v1062_v50 = vadd.f32 %v1877_v18, %v1061_v47 }
 0x23c   :  { %v1085_v51 = vsel %vm855_vm2, %v1062_v50, -inf }
 0x23d   :  { %1086 = vmax.xlane.f32.xlu0 %v1085_v51  ;;  %1077 = vmax.xlane.f32.xlu2 %v1076_v23 }
 0x23f   :  { %1861 = vrot.lane.b32.xlu1 %v1860_v29, %s2034_s3 }
 0x251   :  { %1871 = vrot.lane.b32.xlu0 %v1870_v57, %s2034_s3 }
 0x255   :  { %1866 = vrot.lane.b32.xlu2 %v1865_v52, %s2034_s3 }
 0x28c   :  { %v1075_v33 = vpop.xlane.xlu0 %1074 }
 0x28d   :  { %v1091_v54 = vsub.f32 %v958_v16, %v1075_v33 }
 0x28f   :  { %v1102_v56 = vmul.f32 1.442695, %v1091_v54 }
 0x291   :  { %v1072_v55 = vpop.xlane.xlu1 %1071  ;;  %1879 = vpow2.f32 %v1102_v56 }
 0x292   :  { %v1090_v22 = vsub.f32 %v932_v0, %v1072_v55 }
 0x294   :  { %v1100_v11 = vmul.f32 1.442695, %v1090_v22 }
 0x296   :  { %1881 = vpow2.f32 %v1100_v11 }
 0x297   :  { %v2398_v26 = vpop.eup %1879 }
 0x298   :  { %v1066_v21 = vpop.xlane.xlu2 %1065  ;;  %v1121_v29 = vsel %vm855_vm2, %v2398_v26, 0.0 }
 0x299   :  { %v1088_v40 = vsub.f32 %v880_v35, %v1066_v21  ;;  %1122 = vadd.xlane.f32.xlu0 %v1121_v29  ;;  %v1084_v59 = vpop.xlane.xlu1 %1083 }
 0x29a   :  { %v1094_v62 = vsub.f32 %v1036_v31, %v1084_v59 }
 0x29b   :  { %v1096_v44 = vmul.f32 1.442695, %v1088_v40 }
 0x29c   :  { %v2402_v10 = vpop.eup %1881  ;;  %v1108_v24 = vmul.f32 1.442695, %v1094_v62 }
 0x29d   :  { %v1118_v58 = vsel %vm855_vm2, %v2402_v10, 0.0  ;;  %1883 = vpow2.f32 %v1096_v44 }
 0x29e   :  { %1119 = vadd.xlane.f32.xlu2 %v1118_v58 }
 0x2a0   :  { %v1069_v60 = vpop.xlane.xlu2 %1068 }
 0x2a1   :  { %v1089_v61 = vsub.f32 %v906_v39, %v1069_v60 }
 0x2a3   :  { %v2406_v48 = vpop.eup %1883  ;;  %v1098_v63 = vmul.f32 1.442695, %v1089_v61 }
 0x2a4   :  { %v1112_v49 = vsel %vm855_vm2, %v2406_v48, 0.0 }
 0x2a5   :  { %1885 = vpow2.f32 %v1098_v63  ;;  %1113 = vadd.xlane.f32.xlu1 %v1112_v49 }
 0x2a6   :  { %1887 = vpow2.f32 %v1108_v24 }
 0x2a8   :  { %v1081_v1 = vpop.xlane.xlu2 %1080 }
 0x2a9   :  { %v1093_v14 = vsub.f32 %v2380_v42, %v1081_v1 }
 0x2ab   :  { %v2410_v2 = vpop.eup %1885  ;;  %v1106_v37 = vmul.f32 1.442695, %v1093_v14 }
 0x2ac   :  { %v1115_v3 = vsel %vm855_vm2, %v2410_v2, 0.0  ;;  %v2416_v34 = vpop.eup %1887 }
 0x2ad   :  { %1116 = vadd.xlane.f32.xlu1 %v1115_v3  ;;  %v1130_v17 = vsel %vm855_vm2, %v2416_v34, 0.0 }
 0x2b0   :  { %v1087_v5 = vpop.xlane.xlu0 %1086  ;;  %v1078_v6 = vpop.xlane.xlu2 %1077 }
 0x2b1   :  { %v1095_v8 = vsub.f32 %v1062_v50, %v1087_v5  ;;  %v1092_v9 = vsub.f32 %v984_v46, %v1078_v6  ;;  %v1862_v12 = vpop.permute.xlu1 %1861 }
 0x2b2   :  { %v1864_v16 = vunpack.i.h.bf16 %v1862_v12  ;;  %v1863_v15 = vunpack.i.l.bf16 %v1862_v12 }
 0x2b3   :  { %v1110_v27 = vmul.f32 1.442695, %v1095_v8  ;;  %v1104_v0 = vmul.f32 1.442695, %v1092_v9 }
 0x2b4   :  { %v641_v18 = vrot.slane %v1864_v16, 4  ;;  %v644_v28 = vsel %vm141_vm1, %v1864_v16, %v643_v7  ;;  %v629_v30 = vrot.slane %v1863_v15, 4  ;;  %v632_v31 = vsel %vm141_vm1, %v1863_v15, %v631_v13 }
 0x2b5   :  { %1889 = vpow2.f32 %v1110_v27  ;;  %1131 = vadd.xlane.f32.xlu1 %v1130_v17  ;;  %v652_v35 = vperm.slane %v644_v28, %v2134_v19  ;;  %v640_v36 = vperm.slane %v632_v31, %v2134_v19 }
 0x2b6   :  { %1891 = vpow2.f32 %v1104_v0  ;;  %v642_v38 = vsel %vm141_vm1, %v641_v18, %v1859_v25  ;;  %v630_v39 = vsel %vm141_vm1, %v629_v30, %v1858_v4 }
 0x2b7   :  { %v648_v20 = vperm.slane %v642_v38, %v2134_v19  ;;  %v665_v41 = vrot.slane %v652_v35, 4  ;;  %v636_v42 = vperm.slane %v630_v39, %v2134_v19  ;;  %v667_v43 = vrot.slane %v640_v36, 4 }
 0x2b8   :  { %1893 = vpow2.f32 %v1106_v37  ;;  %v1867_v11 = vpop.permute.xlu2 %1866 }
 0x2b9   :  { %v653_v45 = vrot.slane %v648_v20, 4  ;;  %v655_v46 = vrot.slane %v636_v42, 4  ;;  %v666_v47 = vsel %vm141_vm1, %v665_v41, %v640_v36  ;;  %v668_v50 = vsel %vm141_vm1, %v652_v35, %v667_v43 }
 0x2ba   :  { %v672_v51 = vperm.slane %v666_v47, %v2154_v32  ;;  %v676_v23 = vperm.slane %v668_v50, %v2154_v32  ;;  %v1869_v61 = vunpack.i.h.bf16 %v1867_v11  ;;  %v1868_v62 = vunpack.i.l.bf16 %v1867_v11 }
 0x2bb   :  { %v2433_v57 = vpop.eup %1889  ;;  %v654_v52 = vsel %vm141_vm1, %v653_v45, %v636_v42  ;;  %v656_v53 = vsel %vm141_vm1, %v648_v20, %v655_v46 }
 0x2bc   :  { %v2437_v33 = vpop.eup %1891  ;;  %v660_v54 = vperm.slane %v654_v52, %v2154_v32  ;;  %v664_v56 = vperm.slane %v656_v53, %v2154_v32  ;;  %v681_v55 = vrot.slane %v672_v51, 4  ;;  %v683_v22 = vrot.slane %v676_v23, 4 }
 0x2bd   :  { %v1133_v21 = vsel %vm855_vm2, %v2433_v57, 0.0  ;;  %v1124_v29 = vsel %vm855_vm2, %v2437_v33, 0.0  ;;  %v699_v9 = vrot.slane %v1869_v61, 4  ;;  %v687_v12 = vrot.slane %v1868_v62, 4 }
 0x2be   :  { %v677_v40 = vrot.slane %v660_v54, 4  ;;  %v679_v44 = vrot.slane %v664_v56, 4  ;;  %v684_v58 = vsel %vm141_vm1, 0.0, %v683_v22  ;;  %1134 = vadd.xlane.f32.xlu2 %v1133_v21  ;;  %1125 = vadd.xlane.f32.xlu0 %v1124_v29  ;;  %v752_v59 = vsel %vm141_vm1, %v683_v22, %v672_v51  ;;  %v2451_v3 = vpop.eup %1893 }
 0x2bf   :  { %v757_v60 = vrot.slane %v684_v58, 4  ;;  %v682_v49 = vsel %vm141_vm1, 0.0, %v681_v55  ;;  %v756_v1 = vperm.slane %v752_v59, %v2134_v19  ;;  %v1127_v18 = vsel %vm855_vm2, %v2451_v3, 0.0 }
 0x2c0   :  { %v680_v63 = vsel %vm141_vm1, 0.0, %v679_v44  ;;  %v741_v24 = vsel %vm141_vm1, %v679_v44, %v660_v54  ;;  %v678_v6 = vsel %vm141_vm1, 0.0, %v677_v40 }
 0x2c1   :  { %v746_v25 = vrot.slane %v680_v63, 4  ;;  %v745_v4 = vperm.slane %v741_v24, %v2134_v19  ;;  %v758_v5 = vsel %vm141_vm1, %v757_v60, %v682_v49  ;;  %v777_v8 = vrot.slane %v756_v1, 4 }
 0x2c2   :  { %v762_v7 = vperm.slane %v758_v5, %v2134_v19 }
 0x2c3   :  { %v1872_v13 = vpop.permute.xlu0 %1871  ;;  %v747_v14 = vsel %vm141_vm1, %v746_v25, %v678_v6  ;;  %v765_v16 = vrot.slane %v745_v4, 4 }
 0x2c4   :  { %v1874_v15 = vunpack.i.h.bf16 %v1872_v13  ;;  %v1873_v27 = vunpack.i.l.bf16 %v1872_v13  ;;  %v751_v0 = vperm.slane %v747_v14, %v2134_v19  ;;  %v778_v17 = vsel %vm141_vm1, %v762_v7, %v777_v8 }
 0x2c5   :  { %v786_v28 = vperm.slane %v778_v17, %v2154_v32  ;;  %v775_v30 = vrot.slane %v762_v7, 4 }
 0x2c6   :  { %v697_v31 = vrot.slane %v1874_v15, 4  ;;  %v685_v35 = vrot.slane %v1873_v27, 4  ;;  %v688_v36 = vsel %vm141_vm1, %v1873_v27, %v687_v12  ;;  %v700_v37 = vsel %vm141_vm1, %v1874_v15, %v699_v9  ;;  %1128 = vadd.xlane.f32.xlu0 %v1127_v18 }
 0x2c7   :  { %v696_v38 = vperm.slane %v688_v36, %v2134_v19  ;;  %v708_v39 = vperm.slane %v700_v37, %v2134_v19  ;;  %v766_v20 = vsel %vm141_vm1, %v751_v0, %v765_v16  ;;  %v791_v41 = vrot.slane %v786_v28, 4 }
 0x2c8   :  { %v686_v42 = vsel %vm141_vm1, %v685_v35, %v1868_v62  ;;  %v698_v43 = vsel %vm141_vm1, %v697_v31, %v1869_v61  ;;  %v774_v45 = vperm.slane %v766_v20, %v2154_v32  ;;  %v763_v46 = vrot.slane %v751_v0, 4 }
 0x2c9   :  { %v692_v47 = vperm.slane %v686_v42, %v2134_v19  ;;  %v704_v50 = vperm.slane %v698_v43, %v2134_v19  ;;  %v721_v51 = vrot.slane %v708_v39, 4  ;;  %v723_v23 = vrot.slane %v696_v38, 4 }
 0x2ca   :  { %v792_v52 = vsel %vm141_vm1, %v791_v41, %v774_v45  ;;  %v764_v53 = vsel %vm141_vm1, %v763_v46, %v745_v4  ;;  %v776_v54 = vsel %vm141_vm1, %v775_v30, %v756_v1  ;;  %v793_v56 = vrot.slane %v774_v45, 4 }
 0x2cb   :  { %v709_v55 = vrot.slane %v704_v50, 4  ;;  %v711_v22 = vrot.slane %v692_v47, 4  ;;  %v722_v11 = vsel %vm141_vm1, %v721_v51, %v696_v38  ;;  %v724_v21 = vsel %vm141_vm1, %v708_v39, %v723_v23  ;;  %1240 = vmatpush.msra.mxu1 %v792_v52 }
 0x2cc   :  { %v728_v29 = vperm.slane %v722_v11, %v2154_v32  ;;  %v732_v40 = vperm.slane %v724_v21, %v2154_v32  ;;  %v770_v44 = vperm.slane %v764_v53, %v2154_v32  ;;  %v782_v58 = vperm.slane %v776_v54, %v2154_v32 }
 0x2cd   :  { %v710_v59 = vsel %vm141_vm1, %v709_v55, %v692_v47  ;;  %v712_v60 = vsel %vm141_vm1, %v704_v50, %v711_v22  ;;  %v794_v61 = vsel %vm141_vm1, %v786_v28, %v793_v56 }
 0x2ce   :  { %v716_v62 = vperm.slane %v710_v59, %v2154_v32  ;;  %v720_v63 = vperm.slane %v712_v60, %v2154_v32  ;;  %v737_v49 = vrot.slane %v728_v29, 4  ;;  %v739_v24 = vrot.slane %v732_v40, 4  ;;  %1263 = vmatpush.msra.mxu2 %v794_v61 }
 0x2cf   :  { %v787_v1 = vrot.slane %v782_v58, 4  ;;  %v789_v25 = vrot.slane %v770_v44, 4 }
 0x2d0   :  { %v733_v4 = vrot.slane %v716_v62, 4  ;;  %v735_v5 = vrot.slane %v720_v63, 4  ;;  %v740_v6 = vsel %vm141_vm1, 0.0, %v739_v24  ;;  %v806_v7 = vsel %vm141_vm1, %v739_v24, %v728_v29 }
 0x2d1   :  { %v811_v8 = vrot.slane %v740_v6, 4  ;;  %v788_v9 = vsel %vm141_vm1, %v787_v1, %v770_v44  ;;  %v790_v12 = vsel %vm141_vm1, %v782_v58, %v789_v25  ;;  %v738_v14 = vsel %vm141_vm1, 0.0, %v737_v49 }
 0x2d2   :  { %v736_v13 = vsel %vm141_vm1, 0.0, %v735_v5  ;;  %1194 = vmatpush.msra.mxu3 %v788_v9  ;;  %1217 = vmatpush.msrb.mxu0 %v790_v12  ;;  %v795_v16 = vsel %vm141_vm1, %v735_v5, %v716_v62  ;;  %v810_v15 = vperm.slane %v806_v7, %v2134_v19  ;;  %v734_v18 = vsel %vm141_vm1, 0.0, %v733_v4 }
 0x2d3   :  { %v800_v27 = vrot.slane %v736_v13, 4  ;;  %v799_v0 = vperm.slane %v795_v16, %v2134_v19  ;;  %v812_v17 = vsel %vm141_vm1, %v811_v8, %v738_v14 }
 0x2d4   :  { %v816_v28 = vperm.slane %v812_v17, %v2134_v19  ;;  %v831_v30 = vrot.slane %v810_v15, 4 }
 0x2d5   :  { %v801_v31 = vsel %vm141_vm1, %v800_v27, %v734_v18  ;;  %v819_v35 = vrot.slane %v799_v0, 4 }
 0x2d6   :  { %v805_v36 = vperm.slane %v801_v31, %v2134_v19  ;;  %v832_v37 = vsel %vm141_vm1, %v816_v28, %v831_v30  ;;  %v829_v38 = vrot.slane %v816_v28, 4 }
 0x2d7   :  { %v840_v39 = vperm.slane %v832_v37, %v2154_v32 }
 0x2d8   :  { %v820_v20 = vsel %vm141_vm1, %v805_v36, %v819_v35  ;;  %v817_v41 = vrot.slane %v805_v36, 4  ;;  %v830_v42 = vsel %vm141_vm1, %v829_v38, %v810_v15 }
 0x2d9   :  { %v828_v43 = vperm.slane %v820_v20, %v2154_v32  ;;  %v845_v45 = vrot.slane %v840_v39, 4  ;;  %v836_v46 = vperm.slane %v830_v42, %v2154_v32 }
 0x2da   :  { %v818_v47 = vsel %vm141_vm1, %v817_v41, %v799_v0 }
 0x2db   :  { %v846_v50 = vsel %vm141_vm1, %v845_v45, %v828_v43  ;;  %v824_v51 = vperm.slane %v818_v47, %v2154_v32  ;;  %v841_v23 = vrot.slane %v836_v46, 4  ;;  %v847_v52 = vrot.slane %v828_v43, 4 }
 0x2dc   :  { %1332 = vmatpush.msrb.mxu1 %v846_v50 }
 0x2dd   :  { %v842_v53 = vsel %vm141_vm1, %v841_v23, %v824_v51  ;;  %v848_v54 = vsel %vm141_vm1, %v840_v39, %v847_v52  ;;  %v843_v56 = vrot.slane %v824_v51, 4 }
 0x2de   :  { %1286 = vmatpush.msrb.mxu3 %v842_v53  ;;  %1355 = vmatpush.msrb.mxu2 %v848_v54 }
 0x2df   :  { %v844_v55 = vsel %vm141_vm1, %v836_v46, %v843_v56 }
 0x2e0   :  { %1309 = vmatpush.msra.mxu0 %v844_v55 }
 0x30c   :  { %v1123_v22 = vpop.xlane.xlu0 %1122 }
 0x30d   :  { %1895 = vrcp.f32 %v1123_v22 }
 0x311   :  { %v1120_v11 = vpop.xlane.xlu2 %1119 }
 0x312   :  { %1897 = vrcp.f32 %v1120_v11 }
 0x313   :  { %v1896_v21 = vpop.eup %1895 }
 0x314   :  { %v1147_v29 = vmul.f32 %v1896_v21, %v1123_v22 }
 0x316   :  { %v1155_v44 = vsub.f32 2.0, %v1147_v29 }
 0x318   :  { %v1898_v40 = vpop.eup %1897  ;;  %v1163_v59 = vmul.f32 %v1896_v21, %v1155_v44  ;;  %v1114_v60 = vpop.xlane.xlu1 %1113 }
 0x319   :  { %v1146_v58 = vmul.f32 %v1898_v40, %v1120_v11  ;;  %1899 = vrcp.f32 %v1114_v60 }
 0x31a   :  { %v1171_v62 = vmul.f32 %v2398_v26, %v1163_v59 }
 0x31b   :  { %v1154_v61 = vsub.f32 2.0, %v1146_v58 }
 0x31c   :  { %1827 = vmatmul.msk.f32.vlgmr.msra.gmra.mxu2 %vm855_vm2, %v1171_v62 }
 0x31d   :  { %v1162_v63 = vmul.f32 %v1898_v40, %v1154_v61 }
 0x31f   :  { %v1170_v49 = vmul.f32 %v2402_v10, %v1162_v63  ;;  %v1900_v24 = vpop.eup %1899 }
 0x320   :  { %v1144_v1 = vmul.f32 %v1900_v24, %v1114_v60  ;;  %v1117_v25 = vpop.xlane.xlu1 %1116 }
 0x321   :  { %1826 = vmatmul.msk.f32.vlgmr.msra.gmra.mxu1 %vm855_vm2, %v1170_v49  ;;  %1901 = vrcp.f32 %v1117_v25 }
 0x322   :  { %v1152_v4 = vsub.f32 2.0, %v1144_v1 }
 0x324   :  { %v1160_v5 = vmul.f32 %v1900_v24, %v1152_v4 }
 0x326   :  { %v1168_v6 = vmul.f32 %v2406_v48, %v1160_v5 }
 0x327   :  { %v1902_v7 = vpop.eup %1901 }
 0x328   :  { %v1145_v8 = vmul.f32 %v1902_v7, %v1117_v25  ;;  %1824 = vmatmul.msk.f32.vlgmr.msra.gmra.mxu3 %vm855_vm2, %v1168_v6  ;;  %v1132_v26 = vpop.xlane.xlu1 %1131 }
 0x329   :  { %1903 = vrcp.f32 %v1132_v26 }
 0x32a   :  { %v1153_v9 = vsub.f32 2.0, %v1145_v8 }
 0x32c   :  { %v1161_v12 = vmul.f32 %v1902_v7, %v1153_v9 }
 0x32e   :  { %v1169_v10 = vmul.f32 %v2410_v2, %v1161_v12 }
 0x32f   :  { %v1904_v13 = vpop.eup %1903 }
 0x330   :  { %v1150_v14 = vmul.f32 %v1904_v13, %v1132_v26  ;;  %1825 = vmatmul.msk.f32.vlgmr.msrb.gmra.mxu0 %vm855_vm2, %v1169_v10 }
 0x331   :  { %v1126_v16 = vpop.xlane.xlu0 %1125  ;;  %v1135_v15 = vpop.xlane.xlu2 %1134 }
 0x332   :  { %v1158_v27 = vsub.f32 2.0, %v1150_v14  ;;  %1905 = vrcp.f32 %v1126_v16 }
 0x333   :  { %1907 = vrcp.f32 %v1135_v15 }
 0x334   :  { %v1166_v48 = vmul.f32 %v1904_v13, %v1158_v27 }
 0x336   :  { %v1174_v0 = vmul.f32 %v2416_v34, %v1166_v48 }
 0x338   :  { %v1906_v17 = vpop.eup %1905  ;;  %1830 = vmatmul.msk.f32.vlgmr.msrb.gmra.mxu1 %vm855_vm2, %v1174_v0 }
 0x339   :  { %v1908_v18 = vpop.eup %1907  ;;  %v1148_v28 = vmul.f32 %v1906_v17, %v1126_v16  ;;  %v1129_v30 = vpop.xlane.xlu0 %1128 }
 0x33a   :  { %v1151_v31 = vmul.f32 %v1908_v18, %v1135_v15  ;;  %1909 = vrcp.f32 %v1129_v30 }
 0x33b   :  { %v1156_v2 = vsub.f32 2.0, %v1148_v28 }
 0x33c   :  { %v1159_v35 = vsub.f32 2.0, %v1151_v31 }
 0x33d   :  { %v1164_v36 = vmul.f32 %v1906_v17, %v1156_v2 }
 0x33e   :  { %v1167_v37 = vmul.f32 %v1908_v18, %v1159_v35 }
 0x33f   :  { %v1172_v38 = vmul.f32 %v2437_v33, %v1164_v36 }
 0x340   :  { %v1910_v39 = vpop.eup %1909  ;;  %v1175_v20 = vmul.f32 %v2433_v57, %v1167_v37 }
 0x341   :  { %v1149_v41 = vmul.f32 %v1910_v39, %v1129_v30  ;;  %1828 = vmatmul.msk.f32.vlgmr.msrb.gmra.mxu3 %vm855_vm2, %v1172_v38 }
 0x342   :  { %1831 = vmatmul.msk.f32.vlgmr.msrb.gmra.mxu2 %vm855_vm2, %v1175_v20 }
 0x343   :  { %v1157_v34 = vsub.f32 2.0, %v1149_v41 }
 0x345   :  { %v1165_v42 = vmul.f32 %v1910_v39, %v1157_v34 }
 0x347   :  { %v1173_v43 = vmul.f32 %v2451_v3, %v1165_v42 }
 0x349   :  { %1829 = vmatmul.msk.f32.vlgmr.msra.gmra.mxu0 %vm855_vm2, %v1173_v43 }
 0x39e   :  { %v1242_v45 = vpop.f32.mrf.mxu1 }
 0x39f   :  { %v1265_v46 = vpop.f32.mrf.mxu2  ;;  %v1360_v47 = vrot.slane %v1242_v45, 4 }
 0x3a0   :  { %v1372_v51 = vrot.slane %v1265_v46, 4 }
 0x3ab   :  { %v1196_v50 = vpop.f32.mrf.mxu3 }
 0x3ac   :  { %v1361_v33 = vsel %vm141_vm1, %v1360_v47, %v1196_v50  ;;  %v1362_v23 = vrot.slane %v1196_v50, 4 }
 0x3ad   :  { %v1367_v57 = vperm.slane %v1361_v33, %v2134_v19  ;;  %v1219_v52 = vpop.f32.mrf.mxu0 }
 0x3ae   :  { %v1363_v53 = vsel %vm141_vm1, %v1242_v45, %v1362_v23  ;;  %v1373_v54 = vsel %vm141_vm1, %v1372_v51, %v1219_v52  ;;  %v1374_v56 = vrot.slane %v1219_v52, 4 }
 0x3af   :  { %v1371_v3 = vperm.slane %v1363_v53, %v2134_v19  ;;  %v1386_v55 = vrot.slane %v1367_v57, 4  ;;  %v1379_v22 = vperm.slane %v1373_v54, %v2134_v19 }
 0x3b0   :  { %v1375_v11 = vsel %vm141_vm1, %v1265_v46, %v1374_v56 }
 0x3b1   :  { %v1398_v21 = vrot.slane %v1371_v3, 4  ;;  %v1383_v29 = vperm.slane %v1375_v11, %v2134_v19  ;;  %v1384_v40 = vrot.slane %v1379_v22, 4  ;;  %v1387_v44 = vsel %vm141_vm1, %v1379_v22, %v1386_v55 }
 0x3b2   :  { %v1395_v58 = vperm.slane %v1387_v44, %v2154_v32 }
 0x3b3   :  { %v1385_v59 = vsel %vm141_vm1, %v1384_v40, %v1367_v57  ;;  %v1396_v60 = vrot.slane %v1383_v29, 4  ;;  %v1399_v61 = vsel %vm141_vm1, %v1383_v29, %v1398_v21 }
 0x3b4   :  { %v1391_v62 = vperm.slane %v1385_v59, %v2154_v32  ;;  %v1407_v63 = vperm.slane %v1399_v61, %v2154_v32  ;;  %v1410_v49 = vrot.slane %v1395_v58, 4 }
 0x3b5   :  { %v1397_v24 = vsel %vm141_vm1, %v1396_v60, %v1371_v3  ;;  %v1334_v20 = vpop.f32.mrf.mxu1 }
 0x3b6   :  { %v1403_v1 = vperm.slane %v1397_v24, %v2154_v32  ;;  %v1408_v25 = vrot.slane %v1391_v62, 4  ;;  %v1411_v4 = vsel %vm141_vm1, 0.0, %v1410_v49  ;;  %v1414_v5 = vrot.slane %v1407_v63, 4 }
 0x3b7   :  { %v1472_v6 = vsel %vm141_vm1, %v1410_v49, %v1391_v62  ;;  %v1477_v7 = vrot.slane %v1411_v4, 4  ;;  %v1416_v46 = vrot.slane %v1334_v20, 4 }
 0x3b8   :  { %v1409_v8 = vsel %vm141_vm1, 0.0, %v1408_v25  ;;  %v1412_v26 = vrot.slane %v1403_v1, 4  ;;  %v1415_v9 = vsel %vm141_vm1, 0.0, %v1414_v5  ;;  %v1476_v12 = vperm.slane %v1472_v6, %v2134_v19 }
 0x3b9   :  { %v1488_v10 = vrot.slane %v1415_v9, 4  ;;  %v1478_v13 = vsel %vm141_vm1, %v1477_v7, %v1409_v8  ;;  %v1483_v14 = vsel %vm141_vm1, %v1414_v5, %v1403_v1 }
 0x3ba   :  { %v1413_v16 = vsel %vm141_vm1, 0.0, %v1412_v26  ;;  %v1482_v15 = vperm.slane %v1478_v13, %v2134_v19  ;;  %v1487_v27 = vperm.slane %v1483_v14, %v2134_v19  ;;  %v1496_v48 = vrot.slane %v1476_v12, 4 }
 0x3bb   :  { %v1489_v0 = vsel %vm141_vm1, %v1488_v10, %v1413_v16 }
 0x3bc   :  { %v1493_v17 = vperm.slane %v1489_v0, %v2134_v19  ;;  %v1497_v18 = vsel %vm141_vm1, %v1482_v15, %v1496_v48  ;;  %v1508_v28 = vrot.slane %v1487_v27, 4  ;;  %v1494_v30 = vrot.slane %v1482_v15, 4 }
 0x3bd   :  { %v1505_v31 = vperm.slane %v1497_v18, %v2154_v32 }
 0x3be   :  { %v1509_v2 = vsel %vm141_vm1, %v1493_v17, %v1508_v28  ;;  %v1495_v35 = vsel %vm141_vm1, %v1494_v30, %v1476_v12  ;;  %v1506_v36 = vrot.slane %v1493_v17, 4 }
 0x3bf   :  { %v1517_v37 = vperm.slane %v1509_v2, %v2154_v32  ;;  %v1524_v38 = vrot.slane %v1505_v31, 4  ;;  %v1501_v39 = vperm.slane %v1495_v35, %v2154_v32 }
 0x3c0   :  { %v1507_v41 = vsel %vm141_vm1, %v1506_v36, %v1487_v27 }
 0x3c1   :  { %v1525_v34 = vsel %vm141_vm1, %v1517_v37, %v1524_v38  ;;  %v1522_v42 = vrot.slane %v1517_v37, 4  ;;  %v1513_v43 = vperm.slane %v1507_v41, %v2154_v32  ;;  %v1520_v45 = vrot.slane %v1501_v39, 4 }
 0x3c2   :  { %1598 = vrot.lane.b32.xlu0 %v1525_v34, %s2035_s18 }
 0x3c3   :  { %v1523_v47 = vsel %vm141_vm1, %v1522_v42, %v1505_v31  ;;  %v1518_v50 = vrot.slane %v1513_v43, 4  ;;  %v1521_v51 = vsel %vm141_vm1, %v1513_v43, %v1520_v45 }
 0x3c4   :  { %v1288_v33 = vpop.f32.mrf.mxu3  ;;  %1590 = vrot.lane.b32.xlu1 %v1523_v47, %s2022_s17  ;;  %1582 = vrot.lane.b32.xlu2 %v1521_v51, %s2026_s1 }
 0x3c5   :  { %v1417_v23 = vsel %vm141_vm1, %v1416_v46, %v1288_v33  ;;  %v1418_v57 = vrot.slane %v1288_v33, 4  ;;  %v1357_v52 = vpop.f32.mrf.mxu2  ;;  %v2573_v53 = vsel %vm141_vm1, %v1518_v50, %v1501_v39 }
 0x3c6   :  { %v1423_v54 = vperm.slane %v1417_v23, %v2134_v19  ;;  %v1428_v56 = vrot.slane %v1357_v52, 4  ;;  %v1311_v3 = vpop.f32.mrf.mxu0 }
 0x3c7   :  { %v1419_v55 = vsel %vm141_vm1, %v1334_v20, %v1418_v57  ;;  %v1430_v22 = vrot.slane %v1311_v3, 4  ;;  %v1614_v57 = vld [vmem:[%s2697_s4 + $0x10] sm:$0xff] }
 0x3c8   :  { %v1427_v11 = vperm.slane %v1419_v55, %v2134_v19  ;;  %v1442_v21 = vrot.slane %v1423_v54, 4  ;;  %v1429_v29 = vsel %vm141_vm1, %v1428_v56, %v1311_v3 }
 0x3c9   :  { %v1431_v40 = vsel %vm141_vm1, %v1357_v52, %v1430_v22  ;;  %v1435_v44 = vperm.slane %v1429_v29, %v2134_v19  ;;  %v1613_v52 = vld [vmem:[%s2697_s4 + $0x8] sm:$0xff] }
 0x3ca   :  { %v1454_v58 = vrot.slane %v1427_v11, 4  ;;  %v1439_v59 = vperm.slane %v1431_v40, %v2134_v19 }
 0x3cb   :  { %v1440_v60 = vrot.slane %v1435_v44, 4  ;;  %v1443_v61 = vsel %vm141_vm1, %v1435_v44, %v1442_v21 }
 0x3cc   :  { %v1451_v62 = vperm.slane %v1443_v61, %v2154_v32  ;;  %v1452_v63 = vrot.slane %v1439_v59, 4  ;;  %v1455_v49 = vsel %vm141_vm1, %v1439_v59, %v1454_v58  ;;  %v2634_v61 = vld [vmem:[#allocation7] sm:$0xf] }
 0x3cd   :  { %v1441_v24 = vsel %vm141_vm1, %v1440_v60, %v1423_v54  ;;  %v1463_v1 = vperm.slane %v1455_v49, %v2154_v32  ;;  %v1612_v54 = vld [vmem:[%s2697_s4] sm:$0xff] }
 0x3ce   :  { %v1447_v25 = vperm.slane %v1441_v24, %v2154_v32  ;;  %v1453_v4 = vsel %vm141_vm1, %v1452_v63, %v1427_v11  ;;  %v1466_v5 = vrot.slane %v1451_v62, 4  ;;  %v1617_v62 = vperm.slane %v2634_v61, 0  ;;  %v1917_v49 = vld [vmem:[#allocation2] sm:$0xff] }
 0x3cf   :  { %v1459_v6 = vperm.slane %v1453_v4, %v2154_v32  ;;  %v1470_v7 = vrot.slane %v1463_v1, 4 }
 0x3d0   :  { %v1464_v8 = vrot.slane %v1447_v25, 4  ;;  %v1467_v26 = vsel %vm141_vm1, 0.0, %v1466_v5  ;;  %v1526_v9 = vsel %vm141_vm1, %v1466_v5, %v1447_v25  ;;  %v1918_v5 = vld [vmem:[#allocation2 + $0x8] sm:$0xff] }
 0x3d1   :  { %v1468_v12 = vrot.slane %v1459_v6, 4  ;;  %v1471_v10 = vsel %vm141_vm1, 0.0, %v1470_v7  ;;  %v1530_v13 = vperm.slane %v1526_v9, %v2134_v19  ;;  %v1531_v14 = vrot.slane %v1467_v26, 4 }
 0x3d2   :  { %v1465_v16 = vsel %vm141_vm1, 0.0, %v1464_v8  ;;  %v1542_v15 = vrot.slane %v1471_v10, 4  ;;  %v1537_v27 = vsel %vm141_vm1, %v1470_v7, %v1459_v6  ;;  %v2036_v8 = vmov 32.0  }
 0x3d3   :  { %v1469_v48 = vsel %vm141_vm1, 0.0, %v1468_v12  ;;  %v1532_v0 = vsel %vm141_vm1, %v1531_v14, %v1465_v16  ;;  %v1541_v17 = vperm.slane %v1537_v27, %v2134_v19  ;;  %v1550_v18 = vrot.slane %v1530_v13, 4 }
 0x3d4   :  { %v1536_v28 = vperm.slane %v1532_v0, %v2134_v19  ;;  %v1543_v30 = vsel %vm141_vm1, %v1542_v15, %v1469_v48  ;;  %1911 = vrcp.f32 %v2036_v8 }
 0x3d5   :  { %v1547_v31 = vperm.slane %v1543_v30, %v2134_v19  ;;  %v1562_v2 = vrot.slane %v1541_v17, 4 }
 0x3d6   :  { %v1551_v35 = vsel %vm141_vm1, %v1536_v28, %v1550_v18  ;;  %v1548_v36 = vrot.slane %v1536_v28, 4 }
 0x3d7   :  { %v1559_v37 = vperm.slane %v1551_v35, %v2154_v32  ;;  %v1563_v38 = vsel %vm141_vm1, %v1547_v31, %v1562_v2  ;;  %v1560_v39 = vrot.slane %v1547_v31, 4  ;;  %v1709_v2 = vld [vmem:[%s2699_s6 + $0x18] sm:$0xff]  ;;  %v1708_v35 = vld [vmem:[%s2699_s6 + $0x10] sm:$0xff] }
 0x3d8   :  { %v1571_v20 = vperm.slane %v1563_v38, %v2154_v32  ;;  %v1549_v41 = vsel %vm141_vm1, %v1548_v36, %v1530_v13  ;;  %1732 = vmatpush.msrb.mxu0 %v1709_v2  ;;  %v1707_v36 = vld [vmem:[%s2699_s6 + $0x8] sm:$0xff] }
 0x3d9   :  { %v1578_v34 = vrot.slane %v1559_v37, 4  ;;  %v1555_v42 = vperm.slane %v1549_v41, %v2154_v32  ;;  %v1561_v43 = vsel %vm141_vm1, %v1560_v39, %v1541_v17 }
 0x3da   :  { %v1576_v45 = vrot.slane %v1571_v20, 4  ;;  %v1567_v19 = vperm.slane %v1561_v43, %v2154_v32  ;;  %v1615_v32 = vld [vmem:[%s2697_s4 + $0x18] sm:$0xff]  ;;  %v1912_v26 = vpop.eup %1911  ;;  %1733 = vmatpush.msrb.mxu0 %v1708_v35 }
 0x3db   :  { %v1579_v46 = vsel %vm141_vm1, %v1571_v20, %v1578_v34  ;;  %v1574_v47 = vrot.slane %v1555_v42, 4  ;;  %1636 = vmatpush.msra.mxu3 %v1615_v32  ;;  %v1656_v9 = vmul.f32 32.0, %v1912_v26  ;;  %vm1660_vm5 = vweird.f32 %v1912_v26  ;;  %v1750_v32 = vld [vmem:[%s2701_s8 + $0x28] sm:$0xff] }
 0x3dc   :  { %1600 = vrot.lane.b32.xlu1 %v1579_v46, %s2035_s18  ;;  %v1577_v50 = vsel %vm141_vm1, %v1576_v45, %v1559_v37  ;;  %v1572_v51 = vrot.slane %v1567_v19, 4  ;;  %1734 = vmatpush.msrb.mxu0 %v1707_v36  ;;  %v1706_v37 = vld [vmem:[%s2699_s6] sm:$0xff]  ;;  %v1700_v46 = vperm.slane %v2634_v61, 1 }
 0x3dd   :  { %1592 = vrot.lane.b32.xlu0 %v1577_v50, %s2022_s17  ;;  %v1575_v33 = vsel %vm141_vm1, %v1567_v19, %v1574_v47  ;;  %1637 = vmatpush.msra.mxu3 %v1614_v57  ;;  %v1657_v12 = vsub.f32 1.0, %v1656_v9  ;;  %v1752_v50 = vld [vmem:[%s2701_s8 + $0x38] sm:$0xff] }
 0x3de   :  { %1584 = vrot.lane.b32.xlu2 %v1575_v33, %s2026_s1  ;;  %v1573_v23 = vsel %vm141_vm1, %v1572_v51, %v1555_v42  ;;  %1735 = vmatpush.msrb.mxu0 %v1706_v37  ;;  %v1751_v51 = vld [vmem:[%s2701_s8 + $0x30] sm:$0xff]  ;;  %v1703_v33 = vperm.slane %v2634_v61, 2 }
 0x3df   :  { %1638 = vmatpush.msra.mxu3 %v1613_v52  ;;  %v1658_v10 = vmul.f32 %v1912_v26, %v1657_v12  ;;  %1769 = vmatpush.msra.mxu1 %v1752_v50 }
 0x3e1   :  { %1639 = vmatpush.msra.mxu3 %v1612_v54  ;;  %v1659_v13 = vadd.f32 %v1912_v26, %v1658_v10  ;;  %1770 = vmatpush.msra.mxu1 %v1751_v51 }
 0x3e3   :  { %v1661_v14 = vsel %vm1660_vm5, %v1912_v26, %v1659_v13  ;;  %1771 = vmatpush.msra.mxu1 %v1750_v32  ;;  %v1753_v26 = vperm.slane %v2634_v61, 3 }
 0x41e   :  { %v1583_v56 = vpop.permute.xlu2 %1582 }
 0x41f   :  { %v1604_v3 = vsel %vm855_vm2, %v2573_v53, %v1583_v56  ;;  %v1749_v56 = vld [vmem:[%s2701_s8 + $0x20] sm:$0xff] }
 0x420   :  { %1772 = vmatpush.msra.mxu1 %v1749_v56 }
 0x434   :  { %v1599_v22 = vpop.permute.xlu0 %1598 }
 0x436   :  { %v1591_v55 = vpop.permute.xlu1 %1590 }
 0x437   :  { %v1607_v11 = vsel %vm1606_vm3, %v1604_v3, %v1591_v55 }
 0x438   :  { %v1610_v21 = vsel %vm1609_vm4, %v1607_v11, %v1599_v22  ;;  %v1585_v29 = vpop.permute.xlu2 %1584  ;;  %v1748_v22 = vld [vmem:[%s2701_s8 + $0x18] sm:$0xff] }
 0x439   :  { %1832 = vmatmul.msk.f32.vlgmr.msra.gmra.mxu3 %vm90_vm0, %v1610_v21  ;;  %v1605_v40 = vsel %vm855_vm2, %v1573_v23, %v1585_v29  ;;  %1773 = vmatpush.msra.mxu1 %v1748_v22 }
 0x44e   :  { %v1601_v58 = vpop.permute.xlu1 %1600 }
 0x44f   :  { %v1593_v44 = vpop.permute.xlu0 %1592 }
 0x450   :  { %v1608_v59 = vsel %vm1606_vm3, %v1605_v40, %v1593_v44 }
 0x451   :  { %v1611_v60 = vsel %vm1609_vm4, %v1608_v59, %v1601_v58 }
 0x452   :  { %1833 = vmatmul.msk.f32.gmra.mxu3 %vm90_vm0, %v1611_v60 }
 0x4bc   :  { %v1641_v53 = vpop.f32.mrf.mxu3 }
 0x4bd   :  { %v1642_v63 = vadd.f32 %v1641_v53, %v1617_v62 }
 0x4bf   :  { %v1647_v24 = vadd.f32 %v1917_v49, %v1642_v63  ;;  %v1747_v63 = vld [vmem:[%s2701_s8 + $0x10] sm:$0xff]  ;;  %v1746_v49 = vld [vmem:[%s2701_s8 + $0x8] sm:$0xff] }
 0x4c0   :  { %1774 = vmatpush.msra.mxu1 %v1747_v63 }
 0x4c1   :  { %v1649_v1 = vsel %vm90_vm0, %v1647_v24, 0.0 }
 0x4c2   :  { %1650 = vadd.xlane.f32.xlu2 %v1649_v1  ;;  %1775 = vmatpush.msra.mxu1 %v1746_v49  ;;  %v1878_v1 = vld [vmem:[%s2700_s7] ss:$0 sm:$0xff]  ;;  %s1792_s7 = sshll.u32 %s2702_s9, 4  ;;  %s1793_s7 = int_to_ptr.hbm [resolvable:$true] %s1792_s7 }
 0x4d5   :  { %v1644_v25 = vpop.f32.mrf.mxu3 }
 0x4d6   :  { %v1645_v4 = vadd.f32 %v1644_v25, %v1617_v62 }
 0x4d8   :  { %v1648_v6 = vadd.f32 %v1918_v5, %v1645_v4 }
 0x4da   :  { %v1652_v7 = vsel %vm90_vm0, %v1648_v6, 0.0 }
 0x4db   :  { %1653 = vadd.xlane.f32.xlu0 %v1652_v7 }
 0x535   :  { %v1651_v16 = vpop.xlane.xlu2 %1650 }
 0x536   :  { %v1662_v15 = vmul.f32 %v1661_v14, %v1651_v16 }
 0x538   :  { %v1664_v27 = vsub.f32 %v1647_v24, %v1662_v15  ;;  %v1745_v24 = vld [vmem:[%s2701_s8] sm:$0xff]  ;;  %s2037_s8 = smov [#allocation8]  }
 0x539   :  { %1776 = vmatpush.msra.mxu1 %v1745_v24  ;;  %s1790_s4 = sshll.u32 %s2037_s8, 4  ;;  %s1791_s4 = int_to_ptr.vmem [resolvable:$true] %s1790_s4 }
 0x53a   :  { %v1666_v48 = vmul.f32 %v1664_v27, %v1664_v27 }
 0x53c   :  { %v1668_v0 = vsel %vm90_vm0, %v1666_v48, 0.0 }
 0x53d   :  { %1669 = vadd.xlane.f32.xlu1 %v1668_v0 }
 0x54e   :  { %v1654_v17 = vpop.xlane.xlu0 %1653 }
 0x54f   :  { %v1663_v18 = vmul.f32 %v1661_v14, %v1654_v17 }
 0x551   :  { %v1665_v28 = vsub.f32 %v1648_v6, %v1663_v18 }
 0x553   :  { %v1667_v30 = vmul.f32 %v1665_v28, %v1665_v28 }
 0x555   :  { %v1671_v31 = vsel %vm90_vm0, %v1667_v30, 0.0 }
 0x556   :  { %1672 = vadd.xlane.f32.xlu2 %v1671_v31 }
 0x5b0   :  { %v1670_v38 = vpop.xlane.xlu1 %1669 }
 0x5b1   :  { %v1674_v39 = vmul.f32 %v1670_v38, %v1661_v14 }
 0x5b3   :  { %v1676_v20 = vadd.f32 1e-05, %v1674_v39 }
 0x5b5   :  { %1913 = vrsqrt.f32 %v1676_v20  ;;  %vm1684_vm7 = vweird.f32 %v1676_v20 }
 0x5bb   :  { %v1914_v41 = vpop.eup %1913 }
 0x5bc   :  { %v1679_v34 = vmul.f32 %v1914_v41, %v1676_v20  ;;  %vm1685_vm6 = vweird.f32 %v1914_v41 }
 0x5bd   :  { %vm1686_vm8 = vmor %vm1684_vm7, %vm1685_vm6 }
 0x5be   :  { %v1680_v42 = vmul.f32 %v1914_v41, %v1679_v34 }
 0x5c0   :  { %v1681_v43 = vmul.f32 0.5, %v1680_v42 }
 0x5c2   :  { %v1682_v45 = vsub.f32 1.5, %v1681_v43 }
 0x5c4   :  { %v1683_v19 = vmul.f32 %v1914_v41, %v1682_v45 }
 0x5c6   :  { %v1687_v47 = vsel %vm1686_vm8, %v1914_v41, %v1683_v19 }
 0x5c7   :  { %v1698_v23 = vmul.f32 %v1687_v47, %v1664_v27 }
 0x5c9   :  { %v1701_v57 = vmul.f32 %v1700_v46, %v1698_v23  ;;  %v1673_v52 = vpop.xlane.xlu2 %1672 }
 0x5ca   :  { %v1675_v54 = vmul.f32 %v1673_v52, %v1661_v14 }
 0x5cb   :  { %v1704_v3 = vadd.f32 %v1703_v33, %v1701_v57 }
 0x5cc   :  { %v1677_v55 = vadd.f32 1e-05, %v1675_v54 }
 0x5cd   :  { %1834 = vmatmul.msk.f32.vlgmr.msrb.gmra.mxu0 %vm90_vm0, %v1704_v3 }
 0x5ce   :  { %1915 = vrsqrt.f32 %v1677_v55  ;;  %vm1694_vm10 = vweird.f32 %v1677_v55 }
 0x5d4   :  { %v1916_v11 = vpop.eup %1915 }
 0x5d5   :  { %v1689_v21 = vmul.f32 %v1916_v11, %v1677_v55  ;;  %vm1695_vm9 = vweird.f32 %v1916_v11 }
 0x5d6   :  { %vm1696_vm11 = vmor %vm1694_vm10, %vm1695_vm9 }
 0x5d7   :  { %v1690_v29 = vmul.f32 %v1916_v11, %v1689_v21 }
 0x5d9   :  { %v1691_v40 = vmul.f32 0.5, %v1690_v29 }
 0x5db   :  { %v1692_v44 = vsub.f32 1.5, %v1691_v40 }
 0x5dd   :  { %v1693_v58 = vmul.f32 %v1916_v11, %v1692_v44 }
 0x5df   :  { %v1697_v59 = vsel %vm1696_vm11, %v1916_v11, %v1693_v58 }
 0x5e0   :  { %v1699_v60 = vmul.f32 %v1697_v59, %v1665_v28 }
 0x5e2   :  { %v1702_v62 = vmul.f32 %v1700_v46, %v1699_v60 }
 0x5e4   :  { %v1705_v53 = vadd.f32 %v1703_v33, %v1702_v62 }
 0x5e6   :  { %1835 = vmatmul.msk.f32.gmra.mxu0 %vm90_vm0, %v1705_v53 }
 0x64a   :  { %v1737_v25 = vpop.f32.mrf.mxu0 }
 0x64b   :  { %v1738_v4 = vadd.f32 %v1878_v1, %v1737_v25 }
 0x64d   :  { %v1743_v5 = vmax.f32 %v1738_v4, 0.0 }
 0x64f   :  { %1836 = vmatmul.msk.f32.vlgmr.msra.gmra.mxu1 %vm1754_vm12, %v1743_v5 }
 0x663   :  { %v1740_v6 = vpop.f32.mrf.mxu0 }
 0x664   :  { %v1741_v7 = vadd.f32 %v1878_v1, %v1740_v6 }
 0x666   :  { %v1744_v8 = vmax.f32 %v1741_v7, 0.0 }
 0x668   :  { %1837 = vmatmul.msk.f32.gmra.mxu1 %vm1754_vm12, %v1744_v8 }
 0x6cc   :  { %v1778_v9 = vpop.f32.mrf.mxu1 }
 0x6cd   :  { %v1779_v12 = vadd.f32 %v1778_v9, %v1753_v26 }
 0x6cf   :  { %1784 = vst.msk [vmem:[#allocation8] sm:$0xff] %vm90_vm0, %v1779_v12 }
 0x6e5   :  { %v1781_v10 = vpop.f32.mrf.mxu1 }
 0x6e6   :  { %v1782_v13 = vadd.f32 %v1781_v10, %v1753_v26 }
 0x6e8   :  { %1785 = vst.msk [vmem:[#allocation8 + $0x8] sm:$0xff] %vm90_vm0, %v1782_v13 }
 0x6e9   :  { %1798 = dma.vmem_to_hbm [thread:$0]  %s1791_s4, 256, %s1793_s7, [#allocation4], %s2025_s21, %s2025_s21, %s2026_s1  }
 0x6ea   :  { %2019 = dma.done.wait [#allocation4], 256  }
 0x6eb   :  { %2020 = vsyncadd [#allocation4], 4294967040 }
 0x6ec   :  { %1803 = vsyncpa [#allocation3], 1 }
 0x6ed   :  { %1804 = vsyncpa [#allocation6], 1 }
 0x6ee   :  { %1805 = vsyncpa [#allocation4], 1 }

</bundles_post_ra>
